<compile_context>
chip_gen: v7x
topology: tpu7x:2x2x1
jax: 0.10.0
libtpu: 0.0.40
codegen_flags: <defaults>
</compile_context>

<pallas_src>
import numpy as np
import jax
import jax.numpy as jnp
from jax.experimental import pallas as pl
from jax.experimental.pallas import tpu as pltpu

NEG = -1e30  # big negative, as a Python float so it becomes a kernel literal (no captured consts)


def _ceil_to(x, m):
    return ((x + m - 1) // m) * m


def wctc_loss_forward(pred, target, target_length, batch_size, blank=0):
    """Pallas CTC loss, reduction='mean', blank index `blank`."""
    B, T, C = pred.shape
    assert batch_size == B
    L = target.shape[1]

    # ---- static tiling parameters ------------------------------------------------
    Bblk = 8                                   # samples per grid step
    B_pad = _ceil_to(B, Bblk)
    num_bb = B_pad // Bblk

    S_max = 2 * L + 1                          # extended (blank-interleaved) length
    S_pad = _ceil_to(S_max, 8)
    BS = Bblk * S_pad                          # lane-concatenated DP width

    GROUP = 8                                  # DP inner-loop unroll factor
    T8 = _ceil_to(T, GROUP)
    num_tc = max(1, -(-T8 // 256))             # time chunks (<= 256 frames per chunk)
    tT = _ceil_to(-(-T8 // num_tc), GROUP)
    T_pad = tT * num_tc

    # ---- JAX-side glue: pad + build extended label sequence / skip masks ----------
    pred_p = jnp.pad(pred, ((0, B_pad - B), (0, T_pad - T), (0, 0)))
    tgt = jnp.pad(target.astype(jnp.int32), ((0, B_pad - B), (0, 0)))

    s = jnp.arange(S_pad)
    lab_idx = jnp.clip((s - 1) // 2, 0, L - 1)
    labels_g = tgt[:, lab_idx]                                        # (B_pad, S_pad)
    is_label = ((s % 2) == 1) & (s < S_max)
    ext = jnp.where(is_label[None, :], labels_g, jnp.int32(blank))    # (B_pad, S_pad)
    ext_m2 = jnp.concatenate(
        [jnp.full((B_pad, 2), blank, jnp.int32), ext[:, : S_pad - 2]], axis=1)
    skip = ((ext != blank) & (s[None, :] >= 2) & (ext != ext_m2)).astype(jnp.int32)
    skip_flat = skip.reshape(num_bb, 1, BS)                           # lane layout b*S_pad + s
    s_local = jnp.tile(jnp.arange(S_pad, dtype=jnp.int32), (Bblk,)).reshape(1, BS)

    # ---- kernel --------------------------------------------------------------------
    def kernel(pred_ref, ext_ref, skip_ref, sloc_ref, out_ref, lp_scr):
        tc = pl.program_id(1)

        # Phase 1: log-softmax over classes + gather log-probs at extended labels.
        logits = pred_ref[...].astype(jnp.float32)                    # (Bblk, tT, C)
        mx = jnp.max(logits, axis=-1, keepdims=True)
        z = logits - mx
        logp = z - jnp.log(jnp.sum(jnp.exp(z), axis=-1, keepdims=True))

        c_iota = jax.lax.broadcasted_iota(jnp.int32, (C, S_pad), 0)
        lp_cols = []
        for b in range(Bblk):                                         # static unroll over samples
            ext_b = ext_ref[pl.ds(b, 1), :]                           # (1, S_pad)
            onehot = (c_iota == ext_b).astype(jnp.float32)            # (C, S_pad)
            lp_cols.append(
                jnp.dot(logp[b], onehot,
                        preferred_element_type=jnp.float32,
                        precision=jax.lax.Precision.HIGHEST))         # (tT, S_pad)
        lp_scr[...] = jnp.concatenate(lp_cols, axis=1)                # (tT, BS) lane-dense store

        # Phase 2: alpha DP over this time chunk; alpha carried across chunks in out_ref.
        sloc = sloc_ref[...]                                          # (1, BS) position-within-sample
        m1_ok = sloc >= 1
        skip_ok = skip_ref[...] != 0

        @pl.when(tc == 0)
        def _():
            out_ref[...] = jnp.where(sloc < 2, lp_scr[pl.ds(0, 1), :], NEG)

        t0 = tc * tT
        negf1 = jnp.full((1, 1), NEG, jnp.float32)
        negf2 = jnp.full((1, 2), NEG, jnp.float32)

        def group_body(g, alpha):
            base = pl.multiple_of(g * GROUP, GROUP)
            lp_grp = lp_scr[pl.ds(base, GROUP), :]                    # hoisted (GROUP, BS) load
            for j in range(GROUP):                                    # static 8-way unroll
                t_glob = t0 + g * GROUP + j
                a0 = alpha
                a1 = jnp.where(m1_ok,
                               jnp.concatenate([negf1, a0[:, : BS - 1]], axis=1), NEG)
                a2 = jnp.where(skip_ok,
                               jnp.concatenate([negf2, a0[:, : BS - 2]], axis=1), NEG)
                m3 = jnp.maximum(jnp.maximum(a0, a1), a2)
                lse = m3 + jnp.log(jnp.exp(a0 - m3) + jnp.exp(a1 - m3) + jnp.exp(a2 - m3))
                new_alpha = lp_grp[j:j + 1, :] + lse
                valid = jnp.logical_and(t_glob >= 1, t_glob < T)      # skip t=0 init & T-padding
                alpha = jnp.where(valid, new_alpha, alpha)
            return alpha

        alpha = jax.lax.fori_loop(0, tT // GROUP, group_body, out_ref[...])
        out_ref[...] = alpha

    # VMEM budget: double-buffered pred chunk + f32 logp + lp scratch + slack.
    est = (2 * Bblk * tT * C * pred.dtype.itemsize
           + 2 * Bblk * tT * C * 4
           + 4 * tT * BS * 4
           + 2 * C * S_pad * 4
           + (1 << 20))
    vmem_limit = int(min(max(2 * est, 32 * 1024 * 1024), 96 * 1024 * 1024))

    out = pl.pallas_call(
        kernel,
        out_shape=jax.ShapeDtypeStruct((num_bb, 1, BS), jnp.float32),
        grid_spec=pltpu.PrefetchScalarGridSpec(
            num_scalar_prefetch=0,
            grid=(num_bb, num_tc),
            in_specs=[
                pl.BlockSpec((Bblk, tT, C), lambda bb, tc: (bb, tc, 0)),
                pl.BlockSpec((Bblk, S_pad), lambda bb, tc: (bb, 0)),
                pl.BlockSpec((None, 1, BS), lambda bb, tc: (bb, 0, 0)),
                pl.BlockSpec((1, BS), lambda bb, tc: (0, 0)),
            ],
            out_specs=pl.BlockSpec((None, 1, BS), lambda bb, tc: (bb, 0, 0)),
            scratch_shapes=[pltpu.VMEM((tT, BS), jnp.float32)],
        ),
        compiler_params=pltpu.CompilerParams(
            dimension_semantics=("parallel", "arbitrary"),
            vmem_limit_bytes=vmem_limit),
    )(pred_p, ext, skip_flat, s_local)

    # ---- JAX-side readout: final-state logsumexp, /target_length, batch mean -------
    alpha_fin = out.reshape(B_pad, S_pad)[:B]                         # (B, S_pad)
    l = target_length.astype(jnp.int32)
    a_last = jnp.take_along_axis(alpha_fin, (2 * l)[:, None], axis=1)[:, 0]
    a_prev = jnp.take_along_axis(alpha_fin, (2 * l - 1)[:, None], axis=1)[:, 0]
    mf = jnp.maximum(a_last, a_prev)
    ll = mf + jnp.log(jnp.exp(a_last - mf) + jnp.exp(a_prev - mf))
    # TODO(synk): target_length == 0 divides by zero (same as torch with zero_infinity=False).
    return jnp.mean(-ll / l.astype(jnp.float32))


def ctc_ref_numpy(pred, target, target_length, blank=0):
    """Pure numpy reference (standard CTC, reduction='mean')."""
    pred = np.asarray(pred, np.float64)
    B, T, C = pred.shape
    logp_all = pred - np.log(np.sum(np.exp(pred - pred.max(-1, keepdims=True)),
                                    axis=-1, keepdims=True)) - pred.max(-1, keepdims=True)
    NEGR = -1e30
    losses = []
    for bi in range(B):
        l = int(target_length[bi])
        ext = []
        for j in range(l):
            ext += [blank, int(target[bi, j])]
        ext += [blank]
        Sb = len(ext)
        lp = logp_all[bi]
        alpha = np.full(Sb, NEGR)
        alpha[0] = lp[0, ext[0]]
        if Sb > 1:
            alpha[1] = lp[0, ext[1]]
        for t in range(1, T):
            na = np.full(Sb, NEGR)
            for si in range(Sb):
                cands = [alpha[si]]
                if si >= 1:
                    cands.append(alpha[si - 1])
                if si >= 2 and ext[si] != blank and ext[si] != ext[si - 2]:
                    cands.append(alpha[si - 2])
                mm = max(cands)
                na[si] = lp[t, ext[si]] + mm + np.log(sum(np.exp(c - mm) for c in cands))
            alpha = na
        mm = max(alpha[Sb - 1], alpha[Sb - 2])
        llb = mm + np.log(np.exp(alpha[Sb - 1] - mm) + np.exp(alpha[Sb - 2] - mm))
        losses.append(-llb / l)
    return float(np.mean(losses))


if __name__ == "__main__":
    key = jax.random.PRNGKey(0)
    B, T, C, L = 2, 8, 32, 4
    k1, k2 = jax.random.split(key)
    pred = jax.random.normal(k1, (B, T, C), jnp.float32)           # (batch, time, classes)
    target = jax.random.randint(k2, (B, L), 1, C, jnp.int32)       # labels in [1, C)
    target_length = jnp.array([4, 3], jnp.int32)

    loss = jax.jit(wctc_loss_forward, static_argnums=(3,))(pred, target, target_length, B)
    loss = jax.block_until_ready(loss)

    ref = ctc_ref_numpy(np.asarray(pred), np.asarray(target), np.asarray(target_length))
    assert np.isfinite(float(loss)), f"non-finite loss: {loss}"
    assert abs(float(loss) - ref) < 1e-3, f"mismatch: pallas={float(loss)} ref={ref}"
    print("KERNEL_OK")
</pallas_src>

<mosaic_0001>
module attributes {stable_mosaic.version = 11 : i64} {
  func.func @kernel(%arg0: i32, %arg1: i32, %arg2: memref<8x8x32xf32, #tpu.memory_space<vmem>>, %arg3: memref<8x16xi32, #tpu.memory_space<vmem>>, %arg4: memref<1x1x128xi32, #tpu.memory_space<vmem>>, %arg5: memref<1x128xi32, #tpu.memory_space<vmem>>, %arg6: memref<1x1x128xf32, #tpu.memory_space<vmem>>, %arg7: memref<8x128xf32, #tpu.memory_space<vmem>>) attributes {dimension_semantics = [#tpu.dimension_semantics<parallel>, #tpu.dimension_semantics<arbitrary>], iteration_bounds = array<i64: 1, 1>, scalar_prefetch = 0 : i64, scratch_operands = 1 : i64, tpu.core_type = #tpu.core_type<tc>, window_params = [{transform_indices = @transform_0, window_bounds = array<i64: 8, 8, 32>}, {transform_indices = @transform_1, window_bounds = array<i64: 8, 16>}, {transform_indices = @transform_2, window_bounds = array<i64: 1, 1, 128>}, {pipeline_mode = #tpu.pipeline_mode<synchronous>, transform_indices = @transform_3, window_bounds = array<i64: 1, 128>}, {transform_indices = @transform_4, window_bounds = array<i64: 1, 1, 128>}]} {
    %c0 = arith.constant 0 : index
    %c0_0 = arith.constant 0 : index
    %c0_1 = arith.constant 0 : index
    %0 = vector.load %arg2[%c0, %c0_0, %c0_1] : memref<8x8x32xf32, #tpu.memory_space<vmem>>, vector<8x8x32xf32>
    %cst = arith.constant dense<0xFF800000> : vector<8x8xf32>
    %1 = vector.multi_reduction <maximumf>, %0, %cst [2] : vector<8x8x32xf32> to vector<8x8xf32>
    %2 = vector.shape_cast %1 : vector<8x8xf32> to vector<8x8x1xf32>
    %3 = vector.broadcast %2 : vector<8x8x1xf32> to vector<8x8x32xf32>
    %4 = arith.subf %0, %3 : vector<8x8x32xf32>
    %5 = math.exp %4 : vector<8x8x32xf32>
    %cst_2 = arith.constant dense<0.000000e+00> : vector<8x8xf32>
    %6 = vector.multi_reduction <add>, %5, %cst_2 [2] : vector<8x8x32xf32> to vector<8x8xf32>
    %7 = vector.shape_cast %6 : vector<8x8xf32> to vector<8x8x1xf32>
    %8 = math.log %7 : vector<8x8x1xf32>
    %9 = vector.broadcast %8 : vector<8x8x1xf32> to vector<8x8x32xf32>
    %10 = arith.subf %4, %9 : vector<8x8x32xf32>
    %11 = tpu.iota {dimensions = array<i32: 0>} : vector<32x16xi32>
    %c0_3 = arith.constant 0 : index
    %c0_4 = arith.constant 0 : index
    %12 = vector.load %arg3[%c0_3, %c0_4] : memref<8x16xi32, #tpu.memory_space<vmem>>, vector<1x16xi32>
    %13 = vector.broadcast %12 : vector<1x16xi32> to vector<32x16xi32>
    %14 = arith.cmpi eq, %11, %13 : vector<32x16xi32>
    %15 = arith.extui %14 : vector<32x16xi1> to vector<32x16xi32>
    %16 = arith.sitofp %15 : vector<32x16xi32> to vector<32x16xf32>
    %17 = vector.extract_strided_slice %10 {offsets = [0, 0, 0], sizes = [1, 8, 32], strides = [1, 1, 1]} : vector<8x8x32xf32> to vector<1x8x32xf32>
    %18 = vector.shape_cast %17 : vector<1x8x32xf32> to vector<8x32xf32>
    %cst_5 = arith.constant dense<0.000000e+00> : vector<8x16xf32>
    %19 = tpu.matmul %18, %16, %cst_5 {dimension_numbers = #tpu.dot_dimension_numbers<[1], [0], [0], [1], [0, 0, 1, 1], [], []>, precision = #tpu.contract_precision<fp32>} : vector<8x32xf32>, vector<32x16xf32>, vector<8x16xf32> -> vector<8x16xf32>
    %c1 = arith.constant 1 : index
    %c0_6 = arith.constant 0 : index
    %20 = vector.load %arg3[%c1, %c0_6] : memref<8x16xi32, #tpu.memory_space<vmem>>, vector<1x16xi32>
    %21 = vector.broadcast %20 : vector<1x16xi32> to vector<32x16xi32>
    %22 = arith.cmpi eq, %11, %21 : vector<32x16xi32>
    %23 = arith.extui %22 : vector<32x16xi1> to vector<32x16xi32>
    %24 = arith.sitofp %23 : vector<32x16xi32> to vector<32x16xf32>
    %25 = vector.extract_strided_slice %10 {offsets = [1, 0, 0], sizes = [1, 8, 32], strides = [1, 1, 1]} : vector<8x8x32xf32> to vector<1x8x32xf32>
    %26 = vector.shape_cast %25 : vector<1x8x32xf32> to vector<8x32xf32>
    %cst_7 = arith.constant dense<0.000000e+00> : vector<8x16xf32>
    %27 = tpu.matmul %26, %24, %cst_7 {dimension_numbers = #tpu.dot_dimension_numbers<[1], [0], [0], [1], [0, 0, 1, 1], [], []>, precision = #tpu.contract_precision<fp32>} : vector<8x32xf32>, vector<32x16xf32>, vector<8x16xf32> -> vector<8x16xf32>
    %c2 = arith.constant 2 : index
    %c0_8 = arith.constant 0 : index
    %28 = vector.load %arg3[%c2, %c0_8] : memref<8x16xi32, #tpu.memory_space<vmem>>, vector<1x16xi32>
    %29 = vector.broadcast %28 : vector<1x16xi32> to vector<32x16xi32>
    %30 = arith.cmpi eq, %11, %29 : vector<32x16xi32>
    %31 = arith.extui %30 : vector<32x16xi1> to vector<32x16xi32>
    %32 = arith.sitofp %31 : vector<32x16xi32> to vector<32x16xf32>
    %33 = vector.extract_strided_slice %10 {offsets = [2, 0, 0], sizes = [1, 8, 32], strides = [1, 1, 1]} : vector<8x8x32xf32> to vector<1x8x32xf32>
    %34 = vector.shape_cast %33 : vector<1x8x32xf32> to vector<8x32xf32>
    %cst_9 = arith.constant dense<0.000000e+00> : vector<8x16xf32>
    %35 = tpu.matmul %34, %32, %cst_9 {dimension_numbers = #tpu.dot_dimension_numbers<[1], [0], [0], [1], [0, 0, 1, 1], [], []>, precision = #tpu.contract_precision<fp32>} : vector<8x32xf32>, vector<32x16xf32>, vector<8x16xf32> -> vector<8x16xf32>
    %c3 = arith.constant 3 : index
    %c0_10 = arith.constant 0 : index
    %36 = vector.load %arg3[%c3, %c0_10] : memref<8x16xi32, #tpu.memory_space<vmem>>, vector<1x16xi32>
    %37 = vector.broadcast %36 : vector<1x16xi32> to vector<32x16xi32>
    %38 = arith.cmpi eq, %11, %37 : vector<32x16xi32>
    %39 = arith.extui %38 : vector<32x16xi1> to vector<32x16xi32>
    %40 = arith.sitofp %39 : vector<32x16xi32> to vector<32x16xf32>
    %41 = vector.extract_strided_slice %10 {offsets = [3, 0, 0], sizes = [1, 8, 32], strides = [1, 1, 1]} : vector<8x8x32xf32> to vector<1x8x32xf32>
    %42 = vector.shape_cast %41 : vector<1x8x32xf32> to vector<8x32xf32>
    %cst_11 = arith.constant dense<0.000000e+00> : vector<8x16xf32>
    %43 = tpu.matmul %42, %40, %cst_11 {dimension_numbers = #tpu.dot_dimension_numbers<[1], [0], [0], [1], [0, 0, 1, 1], [], []>, precision = #tpu.contract_precision<fp32>} : vector<8x32xf32>, vector<32x16xf32>, vector<8x16xf32> -> vector<8x16xf32>
    %c4 = arith.constant 4 : index
    %c0_12 = arith.constant 0 : index
    %44 = vector.load %arg3[%c4, %c0_12] : memref<8x16xi32, #tpu.memory_space<vmem>>, vector<1x16xi32>
    %45 = vector.broadcast %44 : vector<1x16xi32> to vector<32x16xi32>
    %46 = arith.cmpi eq, %11, %45 : vector<32x16xi32>
    %47 = arith.extui %46 : vector<32x16xi1> to vector<32x16xi32>
    %48 = arith.sitofp %47 : vector<32x16xi32> to vector<32x16xf32>
    %49 = vector.extract_strided_slice %10 {offsets = [4, 0, 0], sizes = [1, 8, 32], strides = [1, 1, 1]} : vector<8x8x32xf32> to vector<1x8x32xf32>
    %50 = vector.shape_cast %49 : vector<1x8x32xf32> to vector<8x32xf32>
    %cst_13 = arith.constant dense<0.000000e+00> : vector<8x16xf32>
    %51 = tpu.matmul %50, %48, %cst_13 {dimension_numbers = #tpu.dot_dimension_numbers<[1], [0], [0], [1], [0, 0, 1, 1], [], []>, precision = #tpu.contract_precision<fp32>} : vector<8x32xf32>, vector<32x16xf32>, vector<8x16xf32> -> vector<8x16xf32>
    %c5 = arith.constant 5 : index
    %c0_14 = arith.constant 0 : index
    %52 = vector.load %arg3[%c5, %c0_14] : memref<8x16xi32, #tpu.memory_space<vmem>>, vector<1x16xi32>
    %53 = vector.broadcast %52 : vector<1x16xi32> to vector<32x16xi32>
    %54 = arith.cmpi eq, %11, %53 : vector<32x16xi32>
    %55 = arith.extui %54 : vector<32x16xi1> to vector<32x16xi32>
    %56 = arith.sitofp %55 : vector<32x16xi32> to vector<32x16xf32>
    %57 = vector.extract_strided_slice %10 {offsets = [5, 0, 0], sizes = [1, 8, 32], strides = [1, 1, 1]} : vector<8x8x32xf32> to vector<1x8x32xf32>
    %58 = vector.shape_cast %57 : vector<1x8x32xf32> to vector<8x32xf32>
    %cst_15 = arith.constant dense<0.000000e+00> : vector<8x16xf32>
    %59 = tpu.matmul %58, %56, %cst_15 {dimension_numbers = #tpu.dot_dimension_numbers<[1], [0], [0], [1], [0, 0, 1, 1], [], []>, precision = #tpu.contract_precision<fp32>} : vector<8x32xf32>, vector<32x16xf32>, vector<8x16xf32> -> vector<8x16xf32>
    %c6 = arith.constant 6 : index
    %c0_16 = arith.constant 0 : index
    %60 = vector.load %arg3[%c6, %c0_16] : memref<8x16xi32, #tpu.memory_space<vmem>>, vector<1x16xi32>
    %61 = vector.broadcast %60 : vector<1x16xi32> to vector<32x16xi32>
    %62 = arith.cmpi eq, %11, %61 : vector<32x16xi32>
    %63 = arith.extui %62 : vector<32x16xi1> to vector<32x16xi32>
    %64 = arith.sitofp %63 : vector<32x16xi32> to vector<32x16xf32>
    %65 = vector.extract_strided_slice %10 {offsets = [6, 0, 0], sizes = [1, 8, 32], strides = [1, 1, 1]} : vector<8x8x32xf32> to vector<1x8x32xf32>
    %66 = vector.shape_cast %65 : vector<1x8x32xf32> to vector<8x32xf32>
    %cst_17 = arith.constant dense<0.000000e+00> : vector<8x16xf32>
    %67 = tpu.matmul %66, %64, %cst_17 {dimension_numbers = #tpu.dot_dimension_numbers<[1], [0], [0], [1], [0, 0, 1, 1], [], []>, precision = #tpu.contract_precision<fp32>} : vector<8x32xf32>, vector<32x16xf32>, vector<8x16xf32> -> vector<8x16xf32>
    %c7 = arith.constant 7 : index
    %c0_18 = arith.constant 0 : index
    %68 = vector.load %arg3[%c7, %c0_18] : memref<8x16xi32, #tpu.memory_space<vmem>>, vector<1x16xi32>
    %69 = vector.broadcast %68 : vector<1x16xi32> to vector<32x16xi32>
    %70 = arith.cmpi eq, %11, %69 : vector<32x16xi32>
    %71 = arith.extui %70 : vector<32x16xi1> to vector<32x16xi32>
    %72 = arith.sitofp %71 : vector<32x16xi32> to vector<32x16xf32>
    %73 = vector.extract_strided_slice %10 {offsets = [7, 0, 0], sizes = [1, 8, 32], strides = [1, 1, 1]} : vector<8x8x32xf32> to vector<1x8x32xf32>
    %74 = vector.shape_cast %73 : vector<1x8x32xf32> to vector<8x32xf32>
    %cst_19 = arith.constant dense<0.000000e+00> : vector<8x16xf32>
    %75 = tpu.matmul %74, %72, %cst_19 {dimension_numbers = #tpu.dot_dimension_numbers<[1], [0], [0], [1], [0, 0, 1, 1], [], []>, precision = #tpu.contract_precision<fp32>} : vector<8x32xf32>, vector<32x16xf32>, vector<8x16xf32> -> vector<8x16xf32>
    %76 = tpu.concatenate %19, %27, %35, %43, %51, %59, %67, %75 in 1 : vector<8x16xf32>, vector<8x16xf32>, vector<8x16xf32>, vector<8x16xf32>, vector<8x16xf32>, vector<8x16xf32>, vector<8x16xf32>, vector<8x16xf32> -> vector<8x128xf32>
    %c0_20 = arith.constant 0 : index
    %c0_21 = arith.constant 0 : index
    %77 = vector.load %arg7[%c0_20, %c0_21] : memref<8x128xf32, #tpu.memory_space<vmem>>, vector<8x128xf32>
    tpu.vector_store %arg7[%c0_20, %c0_21], %76 {strides = array<i32>} : memref<8x128xf32, #tpu.memory_space<vmem>>, vector<8x128xf32>,
    %c0_22 = arith.constant 0 : index
    %c0_23 = arith.constant 0 : index
    %78 = vector.load %arg5[%c0_22, %c0_23] : memref<1x128xi32, #tpu.memory_space<vmem>>, vector<1x128xi32>
    %c1_i32 = arith.constant 1 : i32
    %79 = vector.broadcast %c1_i32 : i32 to vector<1x128xi32>
    %80 = arith.cmpi sge, %78, %79 : vector<1x128xi32>
    %c0_24 = arith.constant 0 : index
    %c0_25 = arith.constant 0 : index
    %c0_26 = arith.constant 0 : index
    %81 = vector.load %arg4[%c0_24, %c0_25, %c0_26] : memref<1x1x128xi32, #tpu.memory_space<vmem>>, vector<1x1x128xi32>
    %82 = vector.shape_cast %81 : vector<1x1x128xi32> to vector<1x128xi32>
    %c0_i32 = arith.constant 0 : i32
    %83 = vector.broadcast %c0_i32 : i32 to vector<1x128xi32>
    %84 = arith.cmpi ne, %82, %83 : vector<1x128xi32>
    %c0_i32_27 = arith.constant 0 : i32
    %85 = arith.cmpi eq, %arg1, %c0_i32_27 : i32
    %86 = arith.extui %85 : i1 to i32
    %c0_i32_28 = arith.constant 0 : i32
    %87 = arith.cmpi ne, %86, %c0_i32_28 : i32
    scf.if %87 {
      %c2_i32_83 = arith.constant 2 : i32
      %332 = vector.broadcast %c2_i32_83 : i32 to vector<1x128xi32>
      %333 = arith.cmpi slt, %78, %332 : vector<1x128xi32>
      %c0_84 = arith.constant 0 : index
      %c0_85 = arith.constant 0 : index
      %334 = vector.load %arg7[%c0_84, %c0_85] : memref<8x128xf32, #tpu.memory_space<vmem>>, vector<1x128xf32>
      %cst_86 = arith.constant -1.000000e+30 : f32
      %335 = vector.broadcast %cst_86 : f32 to vector<1x128xf32>
      %336 = arith.select %333, %334, %335 : vector<1x128xi1>, vector<1x128xf32>
      %c0_87 = arith.constant 0 : index
      %c0_88 = arith.constant 0 : index
      %c0_89 = arith.constant 0 : index
      %337 = vector.load %arg6[%c0_87, %c0_88, %c0_89] : memref<1x1x128xf32, #tpu.memory_space<vmem>>, vector<1x1x128xf32>
      %338 = vector.shape_cast %337 : vector<1x1x128xf32> to vector<1x128xf32>
      %339 = vector.shape_cast %336 : vector<1x128xf32> to vector<1x1x128xf32>
      tpu.vector_store %arg6[%c0_87, %c0_88, %c0_89], %339 {strides = array<i32>} : memref<1x1x128xf32, #tpu.memory_space<vmem>>, vector<1x1x128xf32>,
    } else {
    }
    %c8_i32 = arith.constant 8 : i32
    %88 = arith.muli %arg1, %c8_i32 : i32
    %cst_29 = arith.constant -1.000000e+30 : f32
    %89 = vector.broadcast %cst_29 : f32 to vector<1x1xf32>
    %cst_30 = arith.constant -1.000000e+30 : f32
    %90 = vector.broadcast %cst_30 : f32 to vector<1x2xf32>
    %c0_31 = arith.constant 0 : index
    %c0_32 = arith.constant 0 : index
    %c0_33 = arith.constant 0 : index
    %91 = vector.load %arg6[%c0_31, %c0_32, %c0_33] : memref<1x1x128xf32, #tpu.memory_space<vmem>>, vector<1x1x128xf32>
    %92 = vector.shape_cast %91 : vector<1x1x128xf32> to vector<1x128xf32>
    %c0_i32_34 = arith.constant 0 : i32
    %c8_i32_35 = arith.constant 8 : i32
    %93 = arith.muli %c0_i32_34, %c8_i32_35 : i32
    %94 = tpu.assume_multiple %93, 8 : i32
    %95 = arith.index_cast %94 : i32 to index
    %c0_36 = arith.constant 0 : index
    %96 = vector.load %arg7[%95, %c0_36] : memref<8x128xf32, #tpu.memory_space<vmem>>, vector<8x128xf32>
    %c8_i32_37 = arith.constant 8 : i32
    %97 = arith.muli %c0_i32_34, %c8_i32_37 : i32
    %98 = arith.addi %88, %97 : i32
    %c0_i32_38 = arith.constant 0 : i32
    %99 = arith.addi %98, %c0_i32_38 : i32
    %100 = vector.extract_strided_slice %92 {offsets = [0, 0], sizes = [1, 127], strides = [1, 1]} : vector<1x128xf32> to vector<1x127xf32>
    %101 = tpu.concatenate %89, %100 in 1 : vector<1x1xf32>, vector<1x127xf32> -> vector<1x128xf32>
    %cst_39 = arith.constant -1.000000e+30 : f32
    %102 = vector.broadcast %cst_39 : f32 to vector<1x128xf32>
    %103 = arith.select %80, %101, %102 : vector<1x128xi1>, vector<1x128xf32>
    %104 = vector.extract_strided_slice %92 {offsets = [0, 0], sizes = [1, 126], strides = [1, 1]} : vector<1x128xf32> to vector<1x126xf32>
    %105 = tpu.concatenate %90, %104 in 1 : vector<1x2xf32>, vector<1x126xf32> -> vector<1x128xf32>
    %cst_40 = arith.constant -1.000000e+30 : f32
    %106 = vector.broadcast %cst_40 : f32 to vector<1x128xf32>
    %107 = arith.select %84, %105, %106 : vector<1x128xi1>, vector<1x128xf32>
    %108 = arith.maximumf %92, %103 : vector<1x128xf32>
    %109 = arith.maximumf %108, %107 : vector<1x128xf32>
    %110 = arith.subf %92, %109 : vector<1x128xf32>
    %111 = math.exp %110 : vector<1x128xf32>
    %112 = arith.subf %103, %109 : vector<1x128xf32>
    %113 = math.exp %112 : vector<1x128xf32>
    %114 = arith.addf %111, %113 : vector<1x128xf32>
    %115 = arith.subf %107, %109 : vector<1x128xf32>
    %116 = math.exp %115 : vector<1x128xf32>
    %117 = arith.addf %114, %116 : vector<1x128xf32>
    %118 = math.log %117 : vector<1x128xf32>
    %119 = arith.addf %109, %118 : vector<1x128xf32>
    %120 = vector.extract_strided_slice %96 {offsets = [0, 0], sizes = [1, 128], strides = [1, 1]} : vector<8x128xf32> to vector<1x128xf32>
    %121 = arith.addf %120, %119 : vector<1x128xf32>
    %c1_i32_41 = arith.constant 1 : i32
    %122 = arith.cmpi sge, %99, %c1_i32_41 : i32
    %c8_i32_42 = arith.constant 8 : i32
    %123 = arith.cmpi slt, %99, %c8_i32_42 : i32
    %124 = arith.andi %122, %123 : i1
    %125 = arith.select %124, %121, %92 : vector<1x128xf32>
    %c8_i32_43 = arith.constant 8 : i32
    %126 = arith.muli %c0_i32_34, %c8_i32_43 : i32
    %127 = arith.addi %88, %126 : i32
    %c1_i32_44 = arith.constant 1 : i32
    %128 = arith.addi %127, %c1_i32_44 : i32
    %129 = vector.extract_strided_slice %125 {offsets = [0, 0], sizes = [1, 127], strides = [1, 1]} : vector<1x128xf32> to vector<1x127xf32>
    %130 = tpu.concatenate %89, %129 in 1 : vector<1x1xf32>, vector<1x127xf32> -> vector<1x128xf32>
    %cst_45 = arith.constant -1.000000e+30 : f32
    %131 = vector.broadcast %cst_45 : f32 to vector<1x128xf32>
    %132 = arith.select %80, %130, %131 : vector<1x128xi1>, vector<1x128xf32>
    %133 = vector.extract_strided_slice %125 {offsets = [0, 0], sizes = [1, 126], strides = [1, 1]} : vector<1x128xf32> to vector<1x126xf32>
    %134 = tpu.concatenate %90, %133 in 1 : vector<1x2xf32>, vector<1x126xf32> -> vector<1x128xf32>
    %cst_46 = arith.constant -1.000000e+30 : f32
    %135 = vector.broadcast %cst_46 : f32 to vector<1x128xf32>
    %136 = arith.select %84, %134, %135 : vector<1x128xi1>, vector<1x128xf32>
    %137 = arith.maximumf %125, %132 : vector<1x128xf32>
    %138 = arith.maximumf %137, %136 : vector<1x128xf32>
    %139 = arith.subf %125, %138 : vector<1x128xf32>
    %140 = math.exp %139 : vector<1x128xf32>
    %141 = arith.subf %132, %138 : vector<1x128xf32>
    %142 = math.exp %141 : vector<1x128xf32>
    %143 = arith.addf %140, %142 : vector<1x128xf32>
    %144 = arith.subf %136, %138 : vector<1x128xf32>
    %145 = math.exp %144 : vector<1x128xf32>
    %146 = arith.addf %143, %145 : vector<1x128xf32>
    %147 = math.log %146 : vector<1x128xf32>
    %148 = arith.addf %138, %147 : vector<1x128xf32>
    %149 = vector.extract_strided_slice %96 {offsets = [1, 0], sizes = [1, 128], strides = [1, 1]} : vector<8x128xf32> to vector<1x128xf32>
    %150 = arith.addf %149, %148 : vector<1x128xf32>
    %c1_i32_47 = arith.constant 1 : i32
    %151 = arith.cmpi sge, %128, %c1_i32_47 : i32
    %c8_i32_48 = arith.constant 8 : i32
    %152 = arith.cmpi slt, %128, %c8_i32_48 : i32
    %153 = arith.andi %151, %152 : i1
    %154 = arith.select %153, %150, %125 : vector<1x128xf32>
    %c8_i32_49 = arith.constant 8 : i32
    %155 = arith.muli %c0_i32_34, %c8_i32_49 : i32
    %156 = arith.addi %88, %155 : i32
    %c2_i32 = arith.constant 2 : i32
    %157 = arith.addi %156, %c2_i32 : i32
    %158 = vector.extract_strided_slice %154 {offsets = [0, 0], sizes = [1, 127], strides = [1, 1]} : vector<1x128xf32> to vector<1x127xf32>
    %159 = tpu.concatenate %89, %158 in 1 : vector<1x1xf32>, vector<1x127xf32> -> vector<1x128xf32>
    %cst_50 = arith.constant -1.000000e+30 : f32
    %160 = vector.broadcast %cst_50 : f32 to vector<1x128xf32>
    %161 = arith.select %80, %159, %160 : vector<1x128xi1>, vector<1x128xf32>
    %162 = vector.extract_strided_slice %154 {offsets = [0, 0], sizes = [1, 126], strides = [1, 1]} : vector<1x128xf32> to vector<1x126xf32>
    %163 = tpu.concatenate %90, %162 in 1 : vector<1x2xf32>, vector<1x126xf32> -> vector<1x128xf32>
    %cst_51 = arith.constant -1.000000e+30 : f32
    %164 = vector.broadcast %cst_51 : f32 to vector<1x128xf32>
    %165 = arith.select %84, %163, %164 : vector<1x128xi1>, vector<1x128xf32>
    %166 = arith.maximumf %154, %161 : vector<1x128xf32>
    %167 = arith.maximumf %166, %165 : vector<1x128xf32>
    %168 = arith.subf %154, %167 : vector<1x128xf32>
    %169 = math.exp %168 : vector<1x128xf32>
    %170 = arith.subf %161, %167 : vector<1x128xf32>
    %171 = math.exp %170 : vector<1x128xf32>
    %172 = arith.addf %169, %171 : vector<1x128xf32>
    %173 = arith.subf %165, %167 : vector<1x128xf32>
    %174 = math.exp %173 : vector<1x128xf32>
    %175 = arith.addf %172, %174 : vector<1x128xf32>
    %176 = math.log %175 : vector<1x128xf32>
    %177 = arith.addf %167, %176 : vector<1x128xf32>
    %178 = vector.extract_strided_slice %96 {offsets = [2, 0], sizes = [1, 128], strides = [1, 1]} : vector<8x128xf32> to vector<1x128xf32>
    %179 = arith.addf %178, %177 : vector<1x128xf32>
    %c1_i32_52 = arith.constant 1 : i32
    %180 = arith.cmpi sge, %157, %c1_i32_52 : i32
    %c8_i32_53 = arith.constant 8 : i32
    %181 = arith.cmpi slt, %157, %c8_i32_53 : i32
    %182 = arith.andi %180, %181 : i1
    %183 = arith.select %182, %179, %154 : vector<1x128xf32>
    %c8_i32_54 = arith.constant 8 : i32
    %184 = arith.muli %c0_i32_34, %c8_i32_54 : i32
    %185 = arith.addi %88, %184 : i32
    %c3_i32 = arith.constant 3 : i32
    %186 = arith.addi %185, %c3_i32 : i32
    %187 = vector.extract_strided_slice %183 {offsets = [0, 0], sizes = [1, 127], strides = [1, 1]} : vector<1x128xf32> to vector<1x127xf32>
    %188 = tpu.concatenate %89, %187 in 1 : vector<1x1xf32>, vector<1x127xf32> -> vector<1x128xf32>
    %cst_55 = arith.constant -1.000000e+30 : f32
    %189 = vector.broadcast %cst_55 : f32 to vector<1x128xf32>
    %190 = arith.select %80, %188, %189 : vector<1x128xi1>, vector<1x128xf32>
    %191 = vector.extract_strided_slice %183 {offsets = [0, 0], sizes = [1, 126], strides = [1, 1]} : vector<1x128xf32> to vector<1x126xf32>
    %192 = tpu.concatenate %90, %191 in 1 : vector<1x2xf32>, vector<1x126xf32> -> vector<1x128xf32>
    %cst_56 = arith.constant -1.000000e+30 : f32
    %193 = vector.broadcast %cst_56 : f32 to vector<1x128xf32>
    %194 = arith.select %84, %192, %193 : vector<1x128xi1>, vector<1x128xf32>
    %195 = arith.maximumf %183, %190 : vector<1x128xf32>
    %196 = arith.maximumf %195, %194 : vector<1x128xf32>
    %197 = arith.subf %183, %196 : vector<1x128xf32>
    %198 = math.exp %197 : vector<1x128xf32>
    %199 = arith.subf %190, %196 : vector<1x128xf32>
    %200 = math.exp %199 : vector<1x128xf32>
    %201 = arith.addf %198, %200 : vector<1x128xf32>
    %202 = arith.subf %194, %196 : vector<1x128xf32>
    %203 = math.exp %202 : vector<1x128xf32>
    %204 = arith.addf %201, %203 : vector<1x128xf32>
    %205 = math.log %204 : vector<1x128xf32>
    %206 = arith.addf %196, %205 : vector<1x128xf32>
    %207 = vector.extract_strided_slice %96 {offsets = [3, 0], sizes = [1, 128], strides = [1, 1]} : vector<8x128xf32> to vector<1x128xf32>
    %208 = arith.addf %207, %206 : vector<1x128xf32>
    %c1_i32_57 = arith.constant 1 : i32
    %209 = arith.cmpi sge, %186, %c1_i32_57 : i32
    %c8_i32_58 = arith.constant 8 : i32
    %210 = arith.cmpi slt, %186, %c8_i32_58 : i32
    %211 = arith.andi %209, %210 : i1
    %212 = arith.select %211, %208, %183 : vector<1x128xf32>
    %c8_i32_59 = arith.constant 8 : i32
    %213 = arith.muli %c0_i32_34, %c8_i32_59 : i32
    %214 = arith.addi %88, %213 : i32
    %c4_i32 = arith.constant 4 : i32
    %215 = arith.addi %214, %c4_i32 : i32
    %216 = vector.extract_strided_slice %212 {offsets = [0, 0], sizes = [1, 127], strides = [1, 1]} : vector<1x128xf32> to vector<1x127xf32>
    %217 = tpu.concatenate %89, %216 in 1 : vector<1x1xf32>, vector<1x127xf32> -> vector<1x128xf32>
    %cst_60 = arith.constant -1.000000e+30 : f32
    %218 = vector.broadcast %cst_60 : f32 to vector<1x128xf32>
    %219 = arith.select %80, %217, %218 : vector<1x128xi1>, vector<1x128xf32>
    %220 = vector.extract_strided_slice %212 {offsets = [0, 0], sizes = [1, 126], strides = [1, 1]} : vector<1x128xf32> to vector<1x126xf32>
    %221 = tpu.concatenate %90, %220 in 1 : vector<1x2xf32>, vector<1x126xf32> -> vector<1x128xf32>
    %cst_61 = arith.constant -1.000000e+30 : f32
    %222 = vector.broadcast %cst_61 : f32 to vector<1x128xf32>
    %223 = arith.select %84, %221, %222 : vector<1x128xi1>, vector<1x128xf32>
    %224 = arith.maximumf %212, %219 : vector<1x128xf32>
    %225 = arith.maximumf %224, %223 : vector<1x128xf32>
    %226 = arith.subf %212, %225 : vector<1x128xf32>
    %227 = math.exp %226 : vector<1x128xf32>
    %228 = arith.subf %219, %225 : vector<1x128xf32>
    %229 = math.exp %228 : vector<1x128xf32>
    %230 = arith.addf %227, %229 : vector<1x128xf32>
    %231 = arith.subf %223, %225 : vector<1x128xf32>
    %232 = math.exp %231 : vector<1x128xf32>
    %233 = arith.addf %230, %232 : vector<1x128xf32>
    %234 = math.log %233 : vector<1x128xf32>
    %235 = arith.addf %225, %234 : vector<1x128xf32>
    %236 = vector.extract_strided_slice %96 {offsets = [4, 0], sizes = [1, 128], strides = [1, 1]} : vector<8x128xf32> to vector<1x128xf32>
    %237 = arith.addf %236, %235 : vector<1x128xf32>
    %c1_i32_62 = arith.constant 1 : i32
    %238 = arith.cmpi sge, %215, %c1_i32_62 : i32
    %c8_i32_63 = arith.constant 8 : i32
    %239 = arith.cmpi slt, %215, %c8_i32_63 : i32
    %240 = arith.andi %238, %239 : i1
    %241 = arith.select %240, %237, %212 : vector<1x128xf32>
    %c8_i32_64 = arith.constant 8 : i32
    %242 = arith.muli %c0_i32_34, %c8_i32_64 : i32
    %243 = arith.addi %88, %242 : i32
    %c5_i32 = arith.constant 5 : i32
    %244 = arith.addi %243, %c5_i32 : i32
    %245 = vector.extract_strided_slice %241 {offsets = [0, 0], sizes = [1, 127], strides = [1, 1]} : vector<1x128xf32> to vector<1x127xf32>
    %246 = tpu.concatenate %89, %245 in 1 : vector<1x1xf32>, vector<1x127xf32> -> vector<1x128xf32>
    %cst_65 = arith.constant -1.000000e+30 : f32
    %247 = vector.broadcast %cst_65 : f32 to vector<1x128xf32>
    %248 = arith.select %80, %246, %247 : vector<1x128xi1>, vector<1x128xf32>
    %249 = vector.extract_strided_slice %241 {offsets = [0, 0], sizes = [1, 126], strides = [1, 1]} : vector<1x128xf32> to vector<1x126xf32>
    %250 = tpu.concatenate %90, %249 in 1 : vector<1x2xf32>, vector<1x126xf32> -> vector<1x128xf32>
    %cst_66 = arith.constant -1.000000e+30 : f32
    %251 = vector.broadcast %cst_66 : f32 to vector<1x128xf32>
    %252 = arith.select %84, %250, %251 : vector<1x128xi1>, vector<1x128xf32>
    %253 = arith.maximumf %241, %248 : vector<1x128xf32>
    %254 = arith.maximumf %253, %252 : vector<1x128xf32>
    %255 = arith.subf %241, %254 : vector<1x128xf32>
    %256 = math.exp %255 : vector<1x128xf32>
    %257 = arith.subf %248, %254 : vector<1x128xf32>
    %258 = math.exp %257 : vector<1x128xf32>
    %259 = arith.addf %256, %258 : vector<1x128xf32>
    %260 = arith.subf %252, %254 : vector<1x128xf32>
    %261 = math.exp %260 : vector<1x128xf32>
    %262 = arith.addf %259, %261 : vector<1x128xf32>
    %263 = math.log %262 : vector<1x128xf32>
    %264 = arith.addf %254, %263 : vector<1x128xf32>
    %265 = vector.extract_strided_slice %96 {offsets = [5, 0], sizes = [1, 128], strides = [1, 1]} : vector<8x128xf32> to vector<1x128xf32>
    %266 = arith.addf %265, %264 : vector<1x128xf32>
    %c1_i32_67 = arith.constant 1 : i32
    %267 = arith.cmpi sge, %244, %c1_i32_67 : i32
    %c8_i32_68 = arith.constant 8 : i32
    %268 = arith.cmpi slt, %244, %c8_i32_68 : i32
    %269 = arith.andi %267, %268 : i1
    %270 = arith.select %269, %266, %241 : vector<1x128xf32>
    %c8_i32_69 = arith.constant 8 : i32
    %271 = arith.muli %c0_i32_34, %c8_i32_69 : i32
    %272 = arith.addi %88, %271 : i32
    %c6_i32 = arith.constant 6 : i32
    %273 = arith.addi %272, %c6_i32 : i32
    %274 = vector.extract_strided_slice %270 {offsets = [0, 0], sizes = [1, 127], strides = [1, 1]} : vector<1x128xf32> to vector<1x127xf32>
    %275 = tpu.concatenate %89, %274 in 1 : vector<1x1xf32>, vector<1x127xf32> -> vector<1x128xf32>
    %cst_70 = arith.constant -1.000000e+30 : f32
    %276 = vector.broadcast %cst_70 : f32 to vector<1x128xf32>
    %277 = arith.select %80, %275, %276 : vector<1x128xi1>, vector<1x128xf32>
    %278 = vector.extract_strided_slice %270 {offsets = [0, 0], sizes = [1, 126], strides = [1, 1]} : vector<1x128xf32> to vector<1x126xf32>
    %279 = tpu.concatenate %90, %278 in 1 : vector<1x2xf32>, vector<1x126xf32> -> vector<1x128xf32>
    %cst_71 = arith.constant -1.000000e+30 : f32
    %280 = vector.broadcast %cst_71 : f32 to vector<1x128xf32>
    %281 = arith.select %84, %279, %280 : vector<1x128xi1>, vector<1x128xf32>
    %282 = arith.maximumf %270, %277 : vector<1x128xf32>
    %283 = arith.maximumf %282, %281 : vector<1x128xf32>
    %284 = arith.subf %270, %283 : vector<1x128xf32>
    %285 = math.exp %284 : vector<1x128xf32>
    %286 = arith.subf %277, %283 : vector<1x128xf32>
    %287 = math.exp %286 : vector<1x128xf32>
    %288 = arith.addf %285, %287 : vector<1x128xf32>
    %289 = arith.subf %281, %283 : vector<1x128xf32>
    %290 = math.exp %289 : vector<1x128xf32>
    %291 = arith.addf %288, %290 : vector<1x128xf32>
    %292 = math.log %291 : vector<1x128xf32>
    %293 = arith.addf %283, %292 : vector<1x128xf32>
    %294 = vector.extract_strided_slice %96 {offsets = [6, 0], sizes = [1, 128], strides = [1, 1]} : vector<8x128xf32> to vector<1x128xf32>
    %295 = arith.addf %294, %293 : vector<1x128xf32>
    %c1_i32_72 = arith.constant 1 : i32
    %296 = arith.cmpi sge, %273, %c1_i32_72 : i32
    %c8_i32_73 = arith.constant 8 : i32
    %297 = arith.cmpi slt, %273, %c8_i32_73 : i32
    %298 = arith.andi %296, %297 : i1
    %299 = arith.select %298, %295, %270 : vector<1x128xf32>
    %c8_i32_74 = arith.constant 8 : i32
    %300 = arith.muli %c0_i32_34, %c8_i32_74 : i32
    %301 = arith.addi %88, %300 : i32
    %c7_i32 = arith.constant 7 : i32
    %302 = arith.addi %301, %c7_i32 : i32
    %303 = vector.extract_strided_slice %299 {offsets = [0, 0], sizes = [1, 127], strides = [1, 1]} : vector<1x128xf32> to vector<1x127xf32>
    %304 = tpu.concatenate %89, %303 in 1 : vector<1x1xf32>, vector<1x127xf32> -> vector<1x128xf32>
    %cst_75 = arith.constant -1.000000e+30 : f32
    %305 = vector.broadcast %cst_75 : f32 to vector<1x128xf32>
    %306 = arith.select %80, %304, %305 : vector<1x128xi1>, vector<1x128xf32>
    %307 = vector.extract_strided_slice %299 {offsets = [0, 0], sizes = [1, 126], strides = [1, 1]} : vector<1x128xf32> to vector<1x126xf32>
    %308 = tpu.concatenate %90, %307 in 1 : vector<1x2xf32>, vector<1x126xf32> -> vector<1x128xf32>
    %cst_76 = arith.constant -1.000000e+30 : f32
    %309 = vector.broadcast %cst_76 : f32 to vector<1x128xf32>
    %310 = arith.select %84, %308, %309 : vector<1x128xi1>, vector<1x128xf32>
    %311 = arith.maximumf %299, %306 : vector<1x128xf32>
    %312 = arith.maximumf %311, %310 : vector<1x128xf32>
    %313 = arith.subf %299, %312 : vector<1x128xf32>
    %314 = math.exp %313 : vector<1x128xf32>
    %315 = arith.subf %306, %312 : vector<1x128xf32>
    %316 = math.exp %315 : vector<1x128xf32>
    %317 = arith.addf %314, %316 : vector<1x128xf32>
    %318 = arith.subf %310, %312 : vector<1x128xf32>
    %319 = math.exp %318 : vector<1x128xf32>
    %320 = arith.addf %317, %319 : vector<1x128xf32>
    %321 = math.log %320 : vector<1x128xf32>
    %322 = arith.addf %312, %321 : vector<1x128xf32>
    %323 = vector.extract_strided_slice %96 {offsets = [7, 0], sizes = [1, 128], strides = [1, 1]} : vector<8x128xf32> to vector<1x128xf32>
    %324 = arith.addf %323, %322 : vector<1x128xf32>
    %c1_i32_77 = arith.constant 1 : i32
    %325 = arith.cmpi sge, %302, %c1_i32_77 : i32
    %c8_i32_78 = arith.constant 8 : i32
    %326 = arith.cmpi slt, %302, %c8_i32_78 : i32
    %327 = arith.andi %325, %326 : i1
    %328 = arith.select %327, %324, %299 : vector<1x128xf32>
    %c1_i32_79 = arith.constant 1 : i32
    %c0_80 = arith.constant 0 : index
    %c0_81 = arith.constant 0 : index
    %c0_82 = arith.constant 0 : index
    %329 = vector.load %arg6[%c0_80, %c0_81, %c0_82] : memref<1x1x128xf32, #tpu.memory_space<vmem>>, vector<1x1x128xf32>
    %330 = vector.shape_cast %329 : vector<1x1x128xf32> to vector<1x128xf32>
    %331 = vector.shape_cast %328 : vector<1x128xf32> to vector<1x1x128xf32>
    tpu.vector_store %arg6[%c0_80, %c0_81, %c0_82], %331 {strides = array<i32>} : memref<1x1x128xf32, #tpu.memory_space<vmem>>, vector<1x1x128xf32>,
    return
  }
  func.func @transform_0(%arg0: i32, %arg1: i32) -> (i32, i32, i32) {
    %c0_i32 = arith.constant 0 : i32
    %c0_i32_0 = arith.constant 0 : i32
    return %arg0, %arg1, %c0_i32 : i32, i32, i32
  }
  func.func @transform_1(%arg0: i32, %arg1: i32) -> (i32, i32) {
    %c0_i32 = arith.constant 0 : i32
    %c0_i32_0 = arith.constant 0 : i32
    return %arg0, %c0_i32 : i32, i32
  }
  func.func @transform_2(%arg0: i32, %arg1: i32) -> (i32, i32, i32) {
    %c0_i32 = arith.constant 0 : i32
    %c0_i32_0 = arith.constant 0 : i32
    %c0_i32_1 = arith.constant 0 : i32
    return %arg0, %c0_i32, %c0_i32_0 : i32, i32, i32
  }
  func.func @transform_3(%arg0: i32, %arg1: i32) -> (i32, i32) {
    %c0_i32 = arith.constant 0 : i32
    %c0_i32_0 = arith.constant 0 : i32
    %c0_i32_1 = arith.constant 0 : i32
    return %c0_i32, %c0_i32_0 : i32, i32
  }
  func.func @transform_4(%arg0: i32, %arg1: i32) -> (i32, i32, i32) {
    %c0_i32 = arith.constant 0 : i32
    %c0_i32_0 = arith.constant 0 : i32
    %c0_i32_1 = arith.constant 0 : i32
    return %arg0, %c0_i32, %c0_i32_0 : i32, i32, i32
  }
}

</mosaic_0001>

<bundles_post_ra>
// kernel: tile.9
= control target key start
LH: loop header
LB: loop body
LE: loop exit
PB: predicated region body
PF: predicated region fallthrough
CT: control target
= control target key end

     0   :  { %s67_s10 = smov 112   ;;  %s68_s11 = smov 80   ;;  %vm3_vm0 = vcmask 130048   ;;  %vm9_vm1 = vcmask 1048448   ;;  %vm15_vm2 = vcmask 917248   ;;  %vm21_vm3 = vcmask 786048   ;;  %s111_s0 = inlined_call_operand.vmem [shape: s32[8,16], index: 0, kind: input, shape index: {}]   ;;  %s112_s1 = inlined_call_operand.vmem [shape: s32[1,128], index: 1, kind: output, shape index: {}]  }
   0x1   :  { %v53_v0 = vld [vmem:[%s111_s0 + $0x7] sm:$0x1]   ;;  %v55_v1 = vld [vmem:[%s111_s0 + $0x5] sm:$0x1]   ;;  %v54_v2 = vld [vmem:[%s111_s0 + $0x6] sm:$0x1]  }
   0x2   :  { %7 = vrot.lane.b32.xlu0 %v53_v0, %s67_s10  ;;  %19 = vrot.lane.b32.xlu1 %v55_v1, %s68_s11  ;;  %v56_v3 = vld [vmem:[%s111_s0 + $0x4] sm:$0x1]   ;;  %v2_v4 = vld [vmem:[%s111_s0] sm:$0x1]   ;;  %s69_s18 = smov 96   ;;  %s70_s19 = smov 64  }
   0x3   :  { %4 = vst.msk [vmem:[#allocation0] sm:$0x1] %vm3_vm0, %v2_v4   ;;  %v57_v5 = vld [vmem:[%s111_s0 + $0x3] sm:$0x1]   ;;  %v58_v6 = vld [vmem:[%s111_s0 + $0x2] sm:$0x1]  }
   0x4   :  { %s71_s24 = smov 48   ;;  %s72_s25 = smov 32   ;;  %v59_v7 = vld [vmem:[%s111_s0 + $0x1] sm:$0x1]   ;;  %vm27_vm4 = vcmask 654848   ;;  %vm33_vm5 = vcmask 523648  }
   0x5   :  { %s73_s0 = smov 16   ;;  %vm39_vm6 = vcmask 392448   ;;  %vm45_vm7 = vcmask 261248  }
   0x6   :  { %13 = vrot.lane.b32.xlu0 %v54_v2, %s69_s18  ;;  %25 = vrot.lane.b32.xlu1 %v56_v3, %s70_s19 }
   0xa   :  { %31 = vrot.lane.b32.xlu0 %v57_v5, %s71_s24  ;;  %37 = vrot.lane.b32.xlu1 %v58_v6, %s72_s25 }
   0xe   :  { %43 = vrot.lane.b32.xlu0 %v59_v7, %s73_s0 }
  0x74   :  { %v8_v8 = vpop.permute.xlu0 %7   ;;  %v20_v9 = vpop.permute.xlu1 %19  }
  0x75   :  { %10 = vst.msk [vmem:[#allocation0] sm:$0x1] %vm9_vm1, %v8_v8  }
  0x78   :  { %v14_v10 = vpop.permute.xlu0 %13   ;;  %v26_v11 = vpop.permute.xlu1 %25  }
  0x79   :  { %16 = vst.msk [vmem:[#allocation0] sm:$0x1] %vm15_vm2, %v14_v10  }
  0x7a   :  { %22 = vst.msk [vmem:[#allocation0] sm:$0x1] %vm21_vm3, %v20_v9  }
  0x7b   :  { %28 = vst.msk [vmem:[#allocation0] sm:$0x1] %vm27_vm4, %v26_v11  }
  0x7c   :  { %v32_v12 = vpop.permute.xlu0 %31   ;;  %v38_v13 = vpop.permute.xlu1 %37  }
  0x7d   :  { %34 = vst.msk [vmem:[#allocation0] sm:$0x1] %vm33_vm5, %v32_v12  }
  0x7e   :  { %40 = vst.msk [vmem:[#allocation0] sm:$0x1] %vm39_vm6, %v38_v13  }
  0x80   :  { %v44_v14 = vpop.permute.xlu0 %43  }
  0x81   :  { %46 = vst.msk [vmem:[#allocation0] sm:$0x1] %vm45_vm7, %v44_v14  }
  0x88   :  { %v50_v15 = vld [vmem:[#allocation0] sm:$0x1] }
  0x89   :  { %52 = vst [vmem:[%s112_s1] sm:$0x1] %v50_v15 }

// kernel: wctc_loss_forward.1
= control target key start
LH: loop header
LB: loop body
LE: loop exit
PB: predicated region body
PF: predicated region fallthrough
CT: control target
= control target key end

     0   :  { %vm7604_vm0 = vcmask 261120   ;;  %v122_v36 = vlaneseq  ;;  %v6194_v40 = vmov 0.0   ;;  %v6195_v46 = vmov 0.0|0.0   ;;  %s6199_s20 = smov 32   ;;  %s6200_s21 = smov 48   ;;  %s7599_s0 = inlined_call_operand.vmem [shape: f32[8,8,32], index: 0, kind: input, shape index: {}]   ;;  %s7600_s1 = inlined_call_operand.vmem [shape: s32[8,16], index: 1, kind: input, shape index: {}]   ;;  %s7601_s3 = inlined_call_operand.vmem [shape: s32[1,128], index: 3, kind: input, shape index: {}]   ;;  %s7602_s4 = inlined_call_operand.vmem [shape: f32[1,1,128], index: 4, kind: output, shape index: {}]   ;;  %s7603_s2 = inlined_call_operand.vmem [shape: s32[1,1,128], index: 2, kind: input, shape index: {}]  }
   0x1   :  { %v17_v0 = vld [vmem:[%s7599_s0] sm:$0xff]  ;;  %v18_v1 = vld [vmem:[%s7599_s0 + $0x8] sm:$0xff]  ;;  %v19_v2 = vld [vmem:[%s7599_s0 + $0x10] sm:$0xff]  ;;  %5724 = vmatprep.subr.bf16.mxu0 %v6195_v46  ;;  %5760 = vmatprep.subr.bf16.mxu1 %v6195_v46  ;;  %v6196_v50 = vmov 1.0|1.0   ;;  %vm6197_vm12 = vmmov 0  }
   0x2   :  { %v26_v3 = vsel %vm7604_vm0, %v17_v0, -inf  ;;  %v32_v4 = vsel %vm7604_vm0, %v19_v2, -inf  ;;  %v20_v5 = vld [vmem:[%s7599_s0 + $0x18] sm:$0xff]  ;;  %v29_v6 = vsel %vm7604_vm0, %v18_v1, -inf  ;;  %v6264_v21 = vld [vmem:[%s7599_s0 + $0x20] sm:$0xff]  ;;  %v6272_v26 = vld [vmem:[%s7599_s0 + $0x28] sm:$0xff]  ;;  %5204 = vmatprep.mubr.msk.f32.mxu0 %vm6197_vm12, %v6194_v40  ;;  %5270 = vmatprep.mubr.msk.f32.mxu1 %vm6197_vm12, %v6194_v40 }
   0x3   :  { %27 = vmax.xlane.f32.xlu0 %v26_v3  ;;  %33 = vmax.xlane.f32.xlu1 %v32_v4  ;;  %v35_v7 = vsel %vm7604_vm0, %v20_v5, -inf  ;;  %v38_v24 = vsel %vm7604_vm0, %v6264_v21, -inf  ;;  %v41_v29 = vsel %vm7604_vm0, %v6272_v26, -inf  ;;  %v6281_v31 = vld [vmem:[%s7599_s0 + $0x30] sm:$0xff]  ;;  %v6289_v34 = vld [vmem:[%s7599_s0 + $0x38] sm:$0xff]  ;;  %v6293_v37 = vshrl.u32 %v122_v36, 7 }
   0x4   :  { %v44_v32 = vsel %vm7604_vm0, %v6281_v31, -inf  ;;  %v47_v35 = vsel %vm7604_vm0, %v6289_v34, -inf  ;;  %v4820_v39 = vld [vmem:[%s7600_s1] ss:$0 sm:$0xff]  ;;  %v4837_v49 = vld [vmem:[%s7600_s1 + $0x1] ss:$0 sm:$0xff] }
   0x5   :  { %v6296_v38 = vadd.s32 8, %v6293_v37  ;;  %vm132_vm1 = vcmp.eq.s32.totalorder %v6293_v37, %v4820_v39  ;;  %v6310_v45 = vadd.s32 16, %v6293_v37  ;;  %v6319_v48 = vadd.s32 24, %v6293_v37  ;;  %s6201_s22 = smov 64   ;;  %s6202_s23 = smov 80  }
   0x6   :  { %v4821_v41 = vsel %vm132_vm1, 1.0, %v6194_v40  ;;  %vm637_vm5 = vcmp.eq.s32.totalorder %v6293_v37, %v4837_v49  ;;  %s6203_s24 = smov 96   ;;  %s6204_s25 = smov 112  }
   0x7   :  { %30 = vmax.xlane.f32.xlu0 %v29_v6  ;;  %36 = vmax.xlane.f32.xlu1 %v35_v7  ;;  %vm133_vm2 = vcmp.eq.s32.totalorder %v6296_v38, %v4820_v39  ;;  %v6305_v43 = vsub.f32 %v4821_v41, %v4821_v41  ;;  %vm134_vm4 = vcmp.eq.s32.totalorder %v6310_v45, %v4820_v39  ;;  %v4838_v54 = vsel %vm637_vm5, 1.0, %v6194_v40  ;;  %s6205_s6 = smov 2   ;;  %s6206_s0 = smov 1  }
   0x8   :  { %v4822_v42 = vsel %vm133_vm2, 1.0, %v6194_v40  ;;  %vm6313_vm3 = vmpackc.low %vm133_vm2, %vm132_vm1  ;;  %vm135_vm6 = vcmp.eq.s32.totalorder %v6319_v48, %v4820_v39  ;;  %v4823_v53 = vsel %vm134_vm4, 1.0, %v6194_v40  ;;  %vm638_vm7 = vcmp.eq.s32.totalorder %v6296_v38, %v4837_v49 }
   0x9   :  { %v6307_v44 = vsub.f32 %v4822_v42, %v4822_v42  ;;  %5726 = vmatpush3.bf16.msk.msra.mxu0 %vm6313_vm3, %v6196_v50  ;;  %v229_v51 = vand.u32 4294901760, %v6305_v43  ;;  %v4824_v57 = vsel %vm135_vm6, 1.0, %v6194_v40  ;;  %v6343_v58 = vsub.f32 %v4823_v53, %v4823_v53  ;;  %vm6345_vm8 = vmpackc.low %vm135_vm6, %vm134_vm4 }
   0xa   :  { %5727 = vmatprep.subr.bf16.mxu0 %v6195_v46  ;;  %v6349_v60 = vsub.f32 %v4824_v57, %v4824_v57  ;;  %v4839_v61 = vsel %vm638_vm7, 1.0, %v6194_v40  ;;  %v6352_v62 = vsub.f32 %v4838_v54, %v4838_v54  ;;  %vm6360_vm9 = vmpackc.low %vm638_vm7, %vm637_vm5  ;;  %vm639_vm10 = vcmp.eq.s32.totalorder %v6310_v45, %v4837_v49 }
   0xb   :  { %v236_v52 = vand.u32 4294901760, %v6307_v44  ;;  %v230_v55 = vsub.f32 %v6305_v43, %v229_v51  ;;  %v6364_v3 = vsub.f32 %v4839_v61, %v4839_v61  ;;  %5762 = vmatpush3.bf16.msk.msra.mxu1 %vm6360_vm9, %v6196_v50  ;;  %vm640_vm11 = vcmp.eq.s32.totalorder %v6319_v48, %v4837_v49 }
   0xc   :  { %v250_v4 = vand.u32 4294901760, %v6349_v60  ;;  %5763 = vmatprep.subr.bf16.mxu1 %v6195_v46  ;;  %vm6383_vm13 = vmpackc.low %vm640_vm11, %vm639_vm10  ;;  %v5737_v36 = vpack.c.bf16 %v6307_v44, %v6305_v43  ;;  %v5740_v42 = vpack.c.bf16 %v6349_v60, %v6343_v58  ;;  %v6504_v43 = vld [vmem:[%s7600_s1 + $0x3] ss:$0 sm:$0xff] }
   0xd   :  { %v237_v56 = vsub.f32 %v6307_v44, %v236_v52  ;;  %v231_v63 = vand.u32 4294901760, %v230_v55  ;;  %5729 = vmatpush3.bf16.msk.msra.mxu0 %vm6345_vm8, %v6196_v50  ;;  %v741_v6 = vand.u32 4294901760, %v6364_v3  ;;  %v5773_v49 = vpack.c.bf16 %v6364_v3, %v6352_v62 }
   0xe   :  { %5730 = vmatprep.subr.bf16.mxu0 %v6195_v46  ;;  %v6420_v54 = vpack.c.bf16 %v236_v52, %v229_v51  ;;  %vm1647_vm4 = vcmp.eq.s32.totalorder %v6293_v37, %v6504_v43  ;;  %vm1648_vm5 = vcmp.eq.s32.totalorder %v6296_v38, %v6504_v43  ;;  %vm1649_vm6 = vcmp.eq.s32.totalorder %v6310_v45, %v6504_v43 }
   0xf   :  { %5765 = vmatpush3.bf16.msk.msra.mxu1 %vm6383_vm13, %v6196_v50  ;;  %vm7607_vm7 = vcmp.eq.s32.totalorder %v6319_v48, %v6504_v43 }
  0x10   :  { %5766 = vmatprep.subr.bf16.mxu1 %v6195_v46 }
  0x90   :  { %v28_v8 = vpop.xlane.xlu0 %27  ;;  %v34_v9 = vpop.xlane.xlu1 %33 }
  0x91   :  { %v6249_v10 = vsub.f32 %v17_v0, %v28_v8  ;;  %v6251_v11 = vsub.f32 %v19_v2, %v34_v9  ;;  %v238_v0 = vand.u32 4294901760, %v237_v56  ;;  %v4840_v8 = vsel %vm639_vm10, 1.0, %v6194_v40 }
  0x93   :  { %v58_v12 = vmul.f32 1.442695, %v6249_v10  ;;  %v62_v14 = vmul.f32 1.442695, %v6251_v11  ;;  %v6376_v7 = vpack.c.bf16 %v238_v0, %v231_v63 }
  0x94   :  { %v31_v13 = vpop.xlane.xlu0 %30  ;;  %v37_v15 = vpop.xlane.xlu1 %36 }
  0x95   :  { %6106 = vpow2.f32 %v58_v12  ;;  %v6255_v16 = vsub.f32 %v18_v1, %v31_v13  ;;  %v6257_v17 = vsub.f32 %v20_v5, %v37_v15  ;;  %v243_v1 = vand.u32 4294901760, %v6343_v58 }
  0x96   :  { %6108 = vpow2.f32 %v62_v14  ;;  %v734_v5 = vand.u32 4294901760, %v6352_v62  ;;  %v4841_v12 = vsel %vm640_vm11, 1.0, %v6194_v40  ;;  %v6387_v14 = vsub.f32 %v4840_v8, %v4840_v8 }
  0x97   :  { %v60_v18 = vmul.f32 1.442695, %v6255_v16  ;;  %v64_v19 = vmul.f32 1.442695, %v6257_v17  ;;  %v244_v15 = vsub.f32 %v6343_v58, %v243_v1  ;;  %v6422_v55 = vpack.c.bf16 %v250_v4, %v243_v1 }
  0x98   :  { %v735_v9 = vsub.f32 %v6352_v62, %v734_v5  ;;  %v6424_v56 = vpack.c.bf16 %v741_v6, %v734_v5 }
  0x99   :  { %6110 = vpow2.f32 %v60_v18  ;;  %v742_v18 = vsub.f32 %v6364_v3, %v741_v6 }
  0x9a   :  { %6112 = vpow2.f32 %v64_v19  ;;  %v6393_v19 = vsub.f32 %v4841_v12, %v4841_v12 }
  0x9c   :  { %v5776_v53 = vpack.c.bf16 %v6393_v19, %v6387_v14 }
  0x9f   :  { %v6107_v20 = vpop.eup %6106 }
  0xa0   :  { %v74_v22 = vsel %vm7604_vm0, %v6107_v20, 0.0  ;;  %v6109_v23 = vpop.eup %6108  ;;  %v251_v20 = vsub.f32 %v6349_v60, %v250_v4 }
  0xa1   :  { %75 = vadd.xlane.f32.xlu0 %v74_v22  ;;  %v80_v28 = vsel %vm7604_vm0, %v6109_v23, 0.0  ;;  %v736_v22 = vand.u32 4294901760, %v735_v9  ;;  %v748_v23 = vand.u32 4294901760, %v6387_v14 }
  0xa3   :  { %v6111_v25 = vpop.eup %6110 }
  0xa4   :  { %v77_v27 = vsel %vm7604_vm0, %v6111_v25, 0.0  ;;  %v6113_v30 = vpop.eup %6112  ;;  %v743_v25 = vand.u32 4294901760, %v742_v18 }
  0xa5   :  { %39 = vmax.xlane.f32.xlu0 %v38_v24  ;;  %78 = vadd.xlane.f32.xlu1 %v77_v27  ;;  %v83_v33 = vsel %vm7604_vm0, %v6113_v30, 0.0  ;;  %v245_v24 = vand.u32 4294901760, %v244_v15  ;;  %v755_v27 = vand.u32 4294901760, %v6393_v19 }
  0xa7   :  { %v6426_v57 = vpack.c.bf16 %v755_v27, %v748_v23 }
  0xa9   :  { %81 = vadd.xlane.f32.xlu0 %v80_v28  ;;  %42 = vmax.xlane.f32.xlu1 %v41_v29  ;;  %v252_v28 = vand.u32 4294901760, %v251_v20  ;;  %v749_v29 = vsub.f32 %v6387_v14, %v748_v23  ;;  %v4872_v14 = vsel %vm1647_vm4, 1.0, %v6194_v40 }
  0xab   :  { %v6403_v30 = vpack.c.bf16 %v252_v28, %v245_v24 }
  0xad   :  { %45 = vmax.xlane.f32.xlu0 %v44_v32  ;;  %84 = vadd.xlane.f32.xlu1 %v83_v33  ;;  %v6405_v32 = vpack.c.bf16 %v743_v25, %v736_v22  ;;  %v756_v33 = vsub.f32 %v6393_v19, %v755_v27  ;;  %v4873_v19 = vsel %vm1648_vm5, 1.0, %v6194_v40 }
  0xaf   :  { %v757_v39 = vand.u32 4294901760, %v756_v33 }
  0xb1   :  { %48 = vmax.xlane.f32.xlu1 %v47_v35  ;;  %v750_v35 = vand.u32 4294901760, %v749_v29 }
  0xb3   :  { %v6410_v41 = vpack.c.bf16 %v757_v39, %v750_v35 }
 0x12e   :  { %v76_v61 = vpop.xlane.xlu0 %75 }
 0x12f   :  { %6114 = vlog2.f32 %v76_v61 }
 0x132   :  { %v79_v63 = vpop.xlane.xlu1 %78  ;;  %v40_v0 = vpop.xlane.xlu0 %39 }
 0x133   :  { %6116 = vlog2.f32 %v79_v63  ;;  %v6429_v8 = vsub.f32 %v6264_v21, %v40_v0 }
 0x135   :  { %v66_v9 = vmul.f32 1.442695, %v6429_v8 }
 0x136   :  { %v43_v12 = vpop.xlane.xlu1 %42  ;;  %v82_v15 = vpop.xlane.xlu0 %81 }
 0x137   :  { %6118 = vpow2.f32 %v66_v9  ;;  %v6433_v51 = vsub.f32 %v6272_v26, %v43_v12 }
 0x139   :  { %v6115_v52 = vpop.eup %6114  ;;  %v68_v1 = vmul.f32 1.442695, %v6433_v51 }
 0x13a   :  { %v99_v4 = vmul.f32 0.6931472, %v6115_v52  ;;  %v85_v5 = vpop.xlane.xlu1 %84  ;;  %v46_v6 = vpop.xlane.xlu0 %45 }
 0x13b   :  { %6120 = vpow2.f32 %v68_v1  ;;  %v6437_v18 = vsub.f32 %v6281_v31, %v46_v6 }
 0x13c   :  { %v114_v21 = vsub.f32 %v6249_v10, %v99_v4 }
 0x13d   :  { %v6117_v20 = vpop.eup %6116  ;;  %v70_v22 = vmul.f32 1.442695, %v6437_v18 }
 0x13e   :  { %v145_v23 = vsel %vm7604_vm0, %v114_v21, 0  ;;  %v101_v24 = vmul.f32 0.6931472, %v6117_v20  ;;  %v49_v26 = vpop.xlane.xlu1 %48  ;;  %v6578_v20 = vsub.f32 %v4872_v14, %v4872_v14 }
 0x13f   :  { %v6442_v25 = vand.u32 4294901760, %v145_v23  ;;  %6122 = vpow2.f32 %v70_v22  ;;  %v6445_v27 = vsub.f32 %v6289_v34, %v49_v26  ;;  %v4874_v26 = vsel %vm1649_vm6, 1.0, %v6194_v40 }
 0x140   :  { %v115_v28 = vsub.f32 %v6255_v16, %v101_v24 }
 0x141   :  { %v6119_v29 = vpop.eup %6118  ;;  %v6449_v31 = vsub.f32 %v145_v23, %v6442_v25  ;;  %v72_v10 = vmul.f32 1.442695, %v6445_v27 }
 0x142   :  { %v650_v33 = vsel %vm7604_vm0, %v115_v28, 0  ;;  %v86_v35 = vsel %vm7604_vm0, %v6119_v29, 0.0  ;;  %v6593_v29 = vld [vmem:[%s7600_s1 + $0x4] ss:$0 sm:$0xff] }
 0x143   :  { %v6454_v39 = vand.u32 4294901760, %v650_v33  ;;  %6124 = vpow2.f32 %v72_v10  ;;  %87 = vadd.xlane.f32.xlu0 %v86_v35  ;;  %v218_v61 = vand.u32 4294901760, %v6449_v31  ;;  %v4875_v10 = vsel %vm7607_vm7, 1.0, %v6194_v40 }
 0x144   :  { %6126 = vlog2.f32 %v82_v15  ;;  %vm7606_vm10 = vcmp.eq.s32.totalorder %v6293_v37, %v6593_v29  ;;  %vm7605_vm11 = vcmp.eq.s32.totalorder %v6296_v38, %v6593_v29 }
 0x145   :  { %v6121_v34 = vpop.eup %6120  ;;  %v6458_v63 = vsub.f32 %v650_v33, %v6454_v39  ;;  %v219_v16 = vsub.f32 %v6449_v31, %v218_v61  ;;  %6128 = vlog2.f32 %v85_v5 }
 0x146   :  { %v89_v0 = vsel %vm7604_vm0, %v6121_v34, 0.0  ;;  %v4889_v34 = vsel %vm7606_vm10, 1.0, %v6194_v40 }
 0x147   :  { %90 = vadd.xlane.f32.xlu1 %v89_v0  ;;  %v220_v9 = vand.u32 4294901760, %v219_v16  ;;  %v723_v12 = vand.u32 4294901760, %v6458_v63  ;;  %v4890_v16 = vsel %vm7605_vm11, 1.0, %v6194_v40  ;;  %vm2155_vm11 = vcmp.eq.s32.totalorder %v6319_v48, %v6593_v29 }
 0x149   :  { %v6123_v52 = vpop.eup %6122  ;;  %5205 = vmatmul.mubr.f32.vlgmr.msra.gmra.mrb[0].mxu0 %v220_v9  ;;  %v724_v1 = vsub.f32 %v6458_v63, %v723_v12  ;;  %v6636_v9 = vsub.f32 %v4889_v34, %v4889_v34 }
 0x14a   :  { %5732 = vmatpush3.bf16.msra.mxu0 %v6376_v7  ;;  %v92_v4 = vsel %vm7604_vm0, %v6123_v52, 0.0  ;;  %5215 = vmatprep.mubr.msk.f32.mxu0 %vm6197_vm12, %v6194_v40  ;;  %v6483_v7 = vld [vmem:[%s7600_s1 + $0x2] ss:$0 sm:$0xff] }
 0x14b   :  { %93 = vadd.xlane.f32.xlu0 %v92_v4  ;;  %5733 = vmatprep.subr.bf16.mxu0 %v6195_v46  ;;  %v725_v6 = vand.u32 4294901760, %v724_v1  ;;  %vm1142_vm14 = vcmp.eq.s32.totalorder %v6293_v37, %v6483_v7  ;;  %vm1143_vm15 = vcmp.eq.s32.totalorder %v6296_v38, %v6483_v7  ;;  %vm1144_vm1 = vcmp.eq.s32.totalorder %v6310_v45, %v6483_v7 }
 0x14c   :  { %v4855_v44 = vsel %vm1142_vm14, 1.0, %v6194_v40  ;;  %v4856_v58 = vsel %vm1143_vm15, 1.0, %v6194_v40  ;;  %vm1145_vm2 = vcmp.eq.s32.totalorder %v6319_v48, %v6483_v7  ;;  %v4857_v62 = vsel %vm1144_vm1, 1.0, %v6194_v40 }
 0x14d   :  { %v6125_v21 = vpop.eup %6124  ;;  %5271 = vmatmul.mubr.f32.vlgmr.msra.gmra.mrb[0].mxu1 %v725_v6  ;;  %v6533_v3 = vsub.f32 %v4855_v44, %v4855_v44  ;;  %v6552_v5 = vsub.f32 %v4857_v62, %v4857_v62  ;;  %v6650_v4 = vsub.f32 %v4890_v16, %v4890_v16  ;;  %v6655_v6 = vld [vmem:[%s7600_s1 + $0x5] ss:$0 sm:$0xff] }
 0x14e   :  { %5735 = vmatpush3.bf16.msra.mxu0 %v6403_v30  ;;  %5768 = vmatpush3.bf16.msra.mxu1 %v6405_v32  ;;  %v95_v15 = vsel %vm7604_vm0, %v6125_v21, 0.0  ;;  %v6127_v30 = vpop.eup %6126  ;;  %vm7609_vm10 = vcmp.eq.s32.totalorder %v6293_v37, %v6655_v6  ;;  %vm7608_vm7 = vcmp.eq.s32.totalorder %v6296_v38, %v6655_v6 }
 0x14f   :  { %96 = vadd.xlane.f32.xlu1 %v95_v15  ;;  %5736 = vmatprep.subr.bf16.mxu0 %v6195_v46  ;;  %v103_v32 = vmul.f32 0.6931472, %v6127_v30  ;;  %v6129_v60 = vpop.eup %6128  ;;  %v7610_v28 = vand.u32 4294901760, %v6552_v5  ;;  %v4892_v15 = vsel %vm2155_vm11, 1.0, %v6194_v40  ;;  %v4906_v30 = vsel %vm7609_vm10, 1.0, %v6194_v40 }
 0x150   :  { %5769 = vmatprep.subr.bf16.mxu1 %v6195_v46  ;;  %5281 = vmatprep.mubr.msk.f32.mxu1 %vm6197_vm12, %v6194_v40  ;;  %v6700_v62 = vsub.f32 %v4906_v30, %v4906_v30  ;;  %vm2660_vm10 = vcmp.eq.s32.totalorder %v6319_v48, %v6655_v6 }
 0x151   :  { %5216 = vmatmul.mubr.f32.vlgmr.msra.gmra.mrb[0].mxu0 %v6442_v25  ;;  %v6648_v1 = vsub.f32 %v6552_v5, %v7610_v28 }
 0x152   :  { %5738 = vmatpush3.bf16.msra.mxu0 %v5737_v36  ;;  %5771 = vmatpush3.bf16.msra.mxu1 %v6410_v41  ;;  %v6541_v36 = vsub.f32 %v4856_v58, %v4856_v58  ;;  %v4858_v41 = vsel %vm1145_vm2, 1.0, %v6194_v40  ;;  %v2249_v58 = vand.u32 4294901760, %v6636_v9 }
 0x153   :  { %5739 = vmatprep.subr.bf16.mxu0 %v6195_v46  ;;  %5772 = vmatprep.subr.bf16.mxu1 %v6195_v46 }
 0x154   :  { %5226 = vmatprep.mubr.msk.f32.mxu0 %vm6197_vm12, %v6194_v40  ;;  %v7611_v22 = vand.u32 4294901760, %v6541_v36 }
 0x155   :  { %5282 = vmatmul.mubr.f32.vlgmr.msra.gmra.mrb[0].mxu1 %v6454_v39 }
 0x156   :  { %5741 = vmatpush3.bf16.msra.mxu0 %v5740_v42  ;;  %5774 = vmatpush3.bf16.msra.mxu1 %v5773_v49  ;;  %v116_v42 = vsub.f32 %v6251_v11, %v103_v32  ;;  %v105_v49 = vmul.f32 0.6931472, %v6129_v60  ;;  %v6563_v11 = vsub.f32 %v4858_v41, %v4858_v41  ;;  %v6692_v32 = vsub.f32 %v4892_v15, %v4892_v15 }
 0x157   :  { %5742 = vmatprep.subr.bf16.mxu0 %v6195_v46  ;;  %5775 = vmatprep.subr.bf16.mxu1 %v6195_v46  ;;  %v1744_v15 = vand.u32 4294901760, %v6578_v20 }
 0x158   :  { %5292 = vmatprep.mubr.msk.f32.mxu1 %vm6197_vm12, %v6194_v40  ;;  %v1155_v23 = vsel %vm7604_vm0, %v116_v42, 0  ;;  %v117_v24 = vsub.f32 %v6257_v17, %v105_v49  ;;  %v6597_v17 = vsub.f32 %v4873_v19, %v4873_v19  ;;  %v1260_v35 = vand.u32 4294901760, %v6563_v11 }
 0x159   :  { %5227 = vmatmul.mubr.f32.vlgmr.msra.gmra.mrb[0].mxu0 %v6449_v31  ;;  %v6623_v0 = vand.u32 4294901760, %v1155_v23  ;;  %v6632_v31 = vsub.f32 %v6541_v36, %v7611_v22  ;;  %v4909_v19 = vsel %vm2660_vm10, 1.0, %v6194_v40 }
 0x15a   :  { %5744 = vmatpush3.bf16.msk.msra.mxu0 %vm6313_vm3, %v6196_v50  ;;  %5777 = vmatpush3.bf16.msra.mxu1 %v5776_v53  ;;  %v7612_v53 = vand.u32 4294901760, %v6533_v3  ;;  %v6639_v52 = vsel %vm7604_vm0, %v117_v24, 0  ;;  %vm2154_vm0 = vcmp.eq.s32.totalorder %v6310_v45, %v6593_v29 }
 0x15b   :  { %5745 = vmatprep.subr.bf16.mxu0 %v6195_v46  ;;  %5778 = vmatprep.subr.bf16.mxu1 %v6195_v46  ;;  %v4891_v21 = vsel %vm2154_vm0, 1.0, %v6194_v40  ;;  %v6696_v60 = vand.u32 4294901760, %v6639_v52 }
 0x15c   :  { %5237 = vmatprep.mubr.msk.f32.mxu0 %vm6197_vm12, %v6194_v40  ;;  %v6612_v33 = vsub.f32 %v6533_v3, %v7612_v53  ;;  %v6690_v44 = vsub.f32 %v4891_v21, %v4891_v21 }
 0x15d   :  { %5293 = vmatmul.mubr.f32.vlgmr.msra.gmra.mrb[0].mxu1 %v6458_v63  ;;  %v4907_v63 = vsel %vm7608_vm7, 1.0, %v6194_v40  ;;  %vm2659_vm7 = vcmp.eq.s32.totalorder %v6310_v45, %v6655_v6  ;;  %v6776_v59 = vsub.f32 %v6639_v52, %v6696_v60 }
 0x15e   :  { %5747 = vmatpush3.bf16.msk.msra.mxu0 %vm6345_vm8, %v6196_v50  ;;  %5780 = vmatpush3.bf16.msk.msra.mxu1 %vm6360_vm9, %v6196_v50  ;;  %v6702_v41 = vsub.f32 %v4907_v63, %v4907_v63  ;;  %v2263_v42 = vand.u32 4294901760, %v6690_v44  ;;  %v4908_v14 = vsel %vm2659_vm7, 1.0, %v6194_v40  ;;  %v1241_v52 = vand.u32 4294901760, %v6612_v33 }
 0x15f   :  { %5748 = vmatprep.subr.bf16.mxu0 %v6195_v46  ;;  %5781 = vmatprep.subr.bf16.mxu1 %v6195_v46 }
 0x160   :  { %5303 = vmatprep.mubr.msk.f32.mxu1 %vm6197_vm12, %v6194_v40  ;;  %v2264_v34 = vsub.f32 %v6690_v44, %v2263_v42  ;;  %v7615_v21 = vand.u32 4294901760, %v6702_v41 }
 0x161   :  { %5238 = vmatmul.mubr.f32.vlgmr.msra.gmra.mrb[0].mxu0 %v218_v61  ;;  %v6634_v61 = vsub.f32 %v4874_v26, %v4874_v26  ;;  %v6732_v26 = vsub.f32 %v4908_v14, %v4908_v14 }
 0x162   :  { %5750 = vmatpush3.bf16.msra.mxu0 %v6420_v54  ;;  %5783 = vmatpush3.bf16.msk.msra.mxu1 %vm6383_vm13, %v6196_v50  ;;  %v6643_v54 = vsub.f32 %v4875_v10, %v4875_v10  ;;  %v6734_v10 = vsub.f32 %v4909_v19, %v4909_v19  ;;  %v2265_v30 = vand.u32 4294901760, %v2264_v34  ;;  %v2762_v28 = vsub.f32 %v6702_v41, %v7615_v21 }
 0x163   :  { %5751 = vmatprep.subr.bf16.mxu0 %v6195_v46  ;;  %5784 = vmatprep.subr.bf16.mxu1 %v6195_v46  ;;  %v7614_v63 = vand.u32 4294901760, %v6732_v26  ;;  %v7618_v34 = vand.u32 4294901760, %v6597_v17 }
 0x164   :  { %5248 = vmatprep.mubr.msk.f32.mxu0 %vm6197_vm12, %v6194_v40  ;;  %v7619_v13 = vand.u32 4294901760, %v6643_v54  ;;  %v5920_v33 = vpack.c.bf16 %v6734_v10, %v6732_v26 }
 0x165   :  { %5304 = vmatmul.mubr.f32.vlgmr.msra.gmra.mrb[0].mxu1 %v723_v12  ;;  %v6686_v12 = vsub.f32 %v1155_v23, %v6623_v0  ;;  %v7617_v23 = vand.u32 4294901760, %v6692_v32 }
 0x166   :  { %5753 = vmatpush3.bf16.msra.mxu0 %v6422_v55  ;;  %5786 = vmatpush3.bf16.msra.mxu1 %v6424_v56  ;;  %v2256_v55 = vand.u32 4294901760, %v6650_v4  ;;  %v2250_v56 = vsub.f32 %v6636_v9, %v2249_v58 }
 0x167   :  { %5754 = vmatprep.subr.bf16.mxu0 %v6195_v46  ;;  %5787 = vmatprep.subr.bf16.mxu1 %v6195_v46  ;;  %v2271_v47 = vsub.f32 %v6692_v32, %v7617_v23  ;;  %v1248_v23 = vand.u32 4294901760, %v6632_v31 }
 0x168   :  { %5314 = vmatprep.mubr.msk.f32.mxu1 %vm6197_vm12, %v6194_v40  ;;  %v2257_v49 = vsub.f32 %v6650_v4, %v2256_v55  ;;  %v2251_v24 = vand.u32 4294901760, %v2250_v56  ;;  %v7613_v56 = vand.u32 4294901760, %v6734_v10 }
 0x169   :  { %5249 = vmatmul.mubr.f32.vlgmr.msra.gmra.mrb[0].mxu0 %v6442_v25  ;;  %v2272_v14 = vand.u32 4294901760, %v2271_v47 }
 0x16a   :  { %5756 = vmatpush3.bf16.msk.msra.mxu0 %vm6313_vm3, %v6196_v50  ;;  %5789 = vmatpush3.bf16.msra.mxu1 %v6426_v57  ;;  %v2258_v16 = vand.u32 4294901760, %v2257_v49  ;;  %v7616_v57 = vand.u32 4294901760, %v6700_v62  ;;  %v2776_v47 = vsub.f32 %v6734_v10, %v7613_v56  ;;  %vm6786_vm3 = vmpackc.low %vm1143_vm15, %vm1142_vm14  ;;  %v2763_v56 = vand.u32 4294901760, %v2762_v28 }
 0x16b   :  { %5757 = vmatprep.subr.bf16.mxu0 %v6195_v46  ;;  %5790 = vmatprep.subr.bf16.mxu1 %v6195_v46  ;;  %v6790_v22 = vpack.c.bf16 %v2272_v14, %v2265_v30  ;;  %v1745_v30 = vsub.f32 %v6578_v20, %v1744_v15  ;;  %v1758_v28 = vand.u32 4294901760, %v6634_v61  ;;  %vm7647_vm15 = vcmp.eq.s32.totalorder %v6293_v37, %v6593_v29 }
 0x16c   :  { %5259 = vmatprep.mubr.msk.f32.mxu0 %vm6197_vm12, %v6194_v40  ;;  %v6752_v49 = vpack.c.bf16 %v2258_v16, %v2251_v24  ;;  %v2755_v19 = vsub.f32 %v6700_v62, %v7616_v57  ;;  %v1228_v24 = vand.u32 4294901760, %v6686_v12  ;;  %v2769_v16 = vsub.f32 %v6732_v26, %v7614_v63 }
 0x16d   :  { %5315 = vmatmul.mubr.f32.vlgmr.msra.gmra.mrb[0].mxu1 %v6454_v39  ;;  %v1261_v63 = vsub.f32 %v6563_v11, %v1260_v35  ;;  %v2777_v57 = vand.u32 4294901760, %v2776_v47  ;;  %v1759_v47 = vsub.f32 %v6634_v61, %v1758_v28 }
 0x16e   :  { %5759 = vmatpush3.bf16.msk.msra.mxu0 %vm6345_vm8, %v6196_v50  ;;  %5792 = vmatpush3.bf16.msk.msra.mxu1 %vm6360_vm9, %v6196_v50  ;;  %v2756_v53 = vand.u32 4294901760, %v2755_v19  ;;  %v2770_v21 = vand.u32 4294901760, %v2769_v16  ;;  %vm6818_vm8 = vmpackc.low %vm1145_vm2, %vm1144_vm1  ;;  %v5803_v19 = vpack.c.bf16 %v1248_v23, %v1241_v52  ;;  %vm7648_vm1 = vcmp.eq.s32.totalorder %v6296_v38, %v6593_v29 }
 0x16f   :  { %5793 = vmatprep.subr.bf16.mxu1 %v6195_v46  ;;  %5796 = vmatprep.subr.bf16.mxu0 %v6195_v46  ;;  %vm6838_vm9 = vmpackc.low %vm1648_vm5, %vm1647_vm4  ;;  %v1262_v16 = vand.u32 4294901760, %v1261_v63  ;;  %vm7653_vm5 = vcmp.eq.s32.totalorder %v6293_v37, %v6655_v6 }
 0x170   :  { %5325 = vmatprep.mubr.msk.f32.mxu1 %vm6197_vm12, %v6194_v40  ;;  %v6804_v14 = vpack.c.bf16 %v2763_v56, %v2756_v53  ;;  %v1752_v53 = vsub.f32 %v6597_v17, %v7618_v34  ;;  %v6828_v31 = vpack.c.bf16 %v2777_v57, %v2770_v21  ;;  %v1229_v56 = vsub.f32 %v6686_v12, %v1228_v24  ;;  %vm7012_vm2 = vmpackc.low %vm7648_vm1, %vm7647_vm15 }
 0x171   :  { %5260 = vmatmul.mubr.f32.vlgmr.msra.gmra.mrb[0].mxu0 %v6442_v25  ;;  %v1733_v57 = vand.u32 4294901760, %v6776_v59  ;;  %v1255_v21 = vand.u32 4294901760, %v6648_v1  ;;  %v1746_v1 = vand.u32 4294901760, %v1745_v30  ;;  %vm7030_vm4 = vmpackc.low %vm2155_vm11, %vm2154_vm0 }
 0x172   :  { %5795 = vmatpush3.bf16.msk.msra.mxu1 %vm6383_vm13, %v6196_v50  ;;  %5798 = vmatpush3.bf16.msk.msra.mxu0 %vm6786_vm3, %v6196_v50  ;;  %v1753_v34 = vand.u32 4294901760, %v1752_v53  ;;  %v1230_v63 = vand.u32 4294901760, %v1229_v56  ;;  %vm7634_vm13 = vcmp.eq.s32.totalorder %v6319_v48, %v6504_v43  ;;  %v1760_v43 = vand.u32 4294901760, %v1759_v47  ;;  %vm7063_vm0 = vmpackc.low %vm2660_vm10, %vm2659_vm7 }
 0x173   :  { %5799 = vmatprep.subr.bf16.mxu0 %v6195_v46  ;;  %5832 = vmatprep.subr.bf16.mxu1 %v6195_v46  ;;  %vm6874_vm14 = vmpackc.low %vm7634_vm13, %vm1649_vm6  ;;  %v1734_v30 = vsub.f32 %v6776_v59, %v1733_v57  ;;  %v5806_v53 = vpack.c.bf16 %v1262_v16, %v1255_v21  ;;  %v5809_v21 = vpack.c.bf16 %v6541_v36, %v6533_v3  ;;  %v7637_v47 = vand.u32 4294901760, %v6692_v32 }
 0x174   :  { %5336 = vmatprep.mubr.msk.f32.mxu0 %vm6197_vm12, %v6194_v40  ;;  %v5839_v56 = vpack.c.bf16 %v1753_v34, %v1746_v1  ;;  %v6907_v16 = vpack.c.bf16 %v2256_v55, %v2249_v58  ;;  %v5848_v58 = vpack.c.bf16 %v6643_v54, %v6634_v61  ;;  %v7638_v55 = vand.u32 4294901760, %v6700_v62 }
 0x175   :  { %5326 = vmatmul.mubr.f32.vlgmr.msra.gmra.mrb[0].mxu1 %v6454_v39  ;;  %v1766_v39 = vsub.f32 %v6643_v54, %v7619_v13  ;;  %v1735_v13 = vand.u32 4294901760, %v1734_v30  ;;  %v6918_v1 = vpack.c.bf16 %v7637_v47, %v2263_v42  ;;  %v7640_v42 = vand.u32 4294901760, %v6732_v26 }
 0x176   :  { %5801 = vmatpush3.bf16.msk.msra.mxu0 %vm6818_vm8, %v6196_v50  ;;  %5834 = vmatpush3.bf16.msk.msra.mxu1 %vm6838_vm9, %v6196_v50  ;;  %vm7654_vm6 = vcmp.eq.s32.totalorder %v6296_v38, %v6655_v6  ;;  %vm7659_vm7 = vcmask 261120  }
 0x177   :  { %5802 = vmatprep.subr.bf16.mxu0 %v6195_v46  ;;  %5835 = vmatprep.subr.bf16.mxu1 %v6195_v46  ;;  %v1767_v23 = vand.u32 4294901760, %v1766_v39  ;;  %v7639_v39 = vand.u32 4294901760, %v6702_v41  ;;  %vm7660_vm10 = vmmov %vm7659_vm7 }
 0x178   :  { %5402 = vmatprep.mubr.msk.f32.mxu1 %vm6197_vm12, %v6194_v40 }
 0x179   :  { %5337 = vmatmul.mubr.f32.vlgmr.msra.gmra.mrb[2].mxu0 %v1230_v63  ;;  %v5842_v34 = vpack.c.bf16 %v1767_v23, %v1760_v43  ;;  %v6926_v23 = vpack.c.bf16 %v7639_v39, %v7638_v55  ;;  %v7641_v63 = vand.u32 4294901760, %v6734_v10  ;;  %v7153_v10 = vld [vmem:[%s7600_s1 + $0x7] ss:$0 sm:$0xff] }
 0x17a   :  { %5804 = vmatpush3.bf16.msra.mxu0 %v5803_v19  ;;  %5837 = vmatpush3.bf16.msk.msra.mxu1 %vm6874_vm14, %v6196_v50  ;;  %v5845_v19 = vpack.c.bf16 %v6597_v17, %v6578_v20  ;;  %vm3667_vm15 = vcmp.eq.s32.totalorder %v6293_v37, %v7153_v10  ;;  %vm3668_vm1 = vcmp.eq.s32.totalorder %v6296_v38, %v7153_v10 }
 0x17b   :  { %5805 = vmatprep.subr.bf16.mxu0 %v6195_v46  ;;  %5838 = vmatprep.subr.bf16.mxu1 %v6195_v46  ;;  %v6940_v30 = vpack.c.bf16 %v7641_v63, %v7640_v42 }
 0x17c   :  { %5347 = vmatprep.mubr.msk.f32.mxu0 %vm6197_vm12, %v6194_v40 }
 0x17d   :  { %5403 = vmatmul.mubr.f32.vlgmr.msra.gmra.mrb[2].mxu1 %v1735_v13  ;;  %v5812_v13 = vpack.c.bf16 %v6563_v11, %v6552_v5 }
 0x17e   :  { %5807 = vmatpush3.bf16.msra.mxu0 %v5806_v53  ;;  %5840 = vmatpush3.bf16.msra.mxu1 %v5839_v56  ;;  %v7642_v53 = vand.u32 4294901760, %v6533_v3  ;;  %v7643_v56 = vand.u32 4294901760, %v6541_v36  ;;  %v7644_v3 = vand.u32 4294901760, %v6552_v5  ;;  %v7646_v5 = vand.u32 4294901760, %v6643_v54 }
 0x17f   :  { %5808 = vmatprep.subr.bf16.mxu0 %v6195_v46  ;;  %5841 = vmatprep.subr.bf16.mxu1 %v6195_v46 }
 0x180   :  { %5413 = vmatprep.mubr.msk.f32.mxu1 %vm6197_vm12, %v6194_v40  ;;  %v5821_v43 = vpack.c.bf16 %v7643_v56, %v7642_v53  ;;  %v5824_v36 = vpack.c.bf16 %v1260_v35, %v7644_v3  ;;  %v5860_v11 = vpack.c.bf16 %v7646_v5, %v1758_v28 }
 0x181   :  { %5348 = vmatmul.mubr.f32.vlgmr.msra.gmra.mrb[2].mxu0 %v6623_v0 }
 0x182   :  { %5810 = vmatpush3.bf16.msra.mxu0 %v5809_v21  ;;  %5843 = vmatpush3.bf16.msra.mxu1 %v5842_v34  ;;  %v7645_v21 = vand.u32 4294901760, %v6597_v17 }
 0x183   :  { %5811 = vmatprep.subr.bf16.mxu0 %v6195_v46  ;;  %5844 = vmatprep.subr.bf16.mxu1 %v6195_v46 }
 0x184   :  { %5358 = vmatprep.mubr.msk.f32.mxu0 %vm6197_vm12, %v6194_v40  ;;  %v5857_v34 = vpack.c.bf16 %v7645_v21, %v1744_v15 }
 0x185   :  { %5414 = vmatmul.mubr.f32.vlgmr.msra.gmra.mrb[2].mxu1 %v6696_v60 }
 0x186   :  { %5813 = vmatpush3.bf16.msra.mxu0 %v5812_v13  ;;  %5846 = vmatpush3.bf16.msra.mxu1 %v5845_v19 }
 0x187   :  { %5814 = vmatprep.subr.bf16.mxu0 %v6195_v46  ;;  %5847 = vmatprep.subr.bf16.mxu1 %v6195_v46 }
 0x188   :  { %5424 = vmatprep.mubr.msk.f32.mxu1 %vm6197_vm12, %v6194_v40 }
 0x189   :  { %5359 = vmatmul.mubr.f32.vlgmr.msra.gmra.mrb[2].mxu0 %v6686_v12 }
 0x18a   :  { %5816 = vmatpush3.bf16.msk.msra.mxu0 %vm6786_vm3, %v6196_v50  ;;  %5849 = vmatpush3.bf16.msra.mxu1 %v5848_v58 }
 0x18b   :  { %5817 = vmatprep.subr.bf16.mxu0 %v6195_v46  ;;  %5850 = vmatprep.subr.bf16.mxu1 %v6195_v46 }
 0x18c   :  { %5369 = vmatprep.mubr.msk.f32.mxu0 %vm6197_vm12, %v6194_v40 }
 0x18d   :  { %5425 = vmatmul.mubr.f32.vlgmr.msra.gmra.mrb[2].mxu1 %v6776_v59 }
 0x18e   :  { %5819 = vmatpush3.bf16.msk.msra.mxu0 %vm6818_vm8, %v6196_v50  ;;  %5852 = vmatpush3.bf16.msk.msra.mxu1 %vm6838_vm9, %v6196_v50 }
 0x18f   :  { %5820 = vmatprep.subr.bf16.mxu0 %v6195_v46  ;;  %5853 = vmatprep.subr.bf16.mxu1 %v6195_v46 }
 0x190   :  { %5435 = vmatprep.mubr.msk.f32.mxu1 %vm6197_vm12, %v6194_v40 }
 0x191   :  { %5370 = vmatmul.mubr.f32.vlgmr.msra.gmra.mrb[2].mxu0 %v1228_v24 }
 0x192   :  { %5822 = vmatpush3.bf16.msra.mxu0 %v5821_v43  ;;  %5855 = vmatpush3.bf16.msk.msra.mxu1 %vm6874_vm14, %v6196_v50 }
 0x193   :  { %5823 = vmatprep.subr.bf16.mxu0 %v6195_v46  ;;  %5856 = vmatprep.subr.bf16.mxu1 %v6195_v46 }
 0x194   :  { %5380 = vmatprep.mubr.msk.f32.mxu0 %vm6197_vm12, %v6194_v40 }
 0x195   :  { %5436 = vmatmul.mubr.f32.vlgmr.msra.gmra.mrb[2].mxu1 %v1733_v57 }
 0x196   :  { %5825 = vmatpush3.bf16.msra.mxu0 %v5824_v36  ;;  %5858 = vmatpush3.bf16.msra.mxu1 %v5857_v34 }
 0x197   :  { %5826 = vmatprep.subr.bf16.mxu0 %v6195_v46  ;;  %5859 = vmatprep.subr.bf16.mxu1 %v6195_v46 }
 0x198   :  { %5446 = vmatprep.mubr.msk.f32.mxu1 %vm6197_vm12, %v6194_v40 }
 0x199   :  { %5381 = vmatmul.mubr.f32.vlgmr.msra.gmra.mrb[2].mxu0 %v6623_v0 }
 0x19a   :  { %5828 = vmatpush3.bf16.msk.msra.mxu0 %vm6786_vm3, %v6196_v50  ;;  %5861 = vmatpush3.bf16.msra.mxu1 %v5860_v11  ;;  %vm7042_vm3 = vmpackc.low %vm7654_vm6, %vm7653_vm5  ;;  %vm3669_vm6 = vcmp.eq.s32.totalorder %v6310_v45, %v7153_v10 }
 0x19b   :  { %5829 = vmatprep.subr.bf16.mxu0 %v6195_v46  ;;  %5862 = vmatprep.subr.bf16.mxu1 %v6195_v46  ;;  %vm7665_vm5 = vmmov %vm7659_vm7  ;;  %v4942_v20 = vsel %vm3669_vm6, 1.0, %v6194_v40 }
 0x19c   :  { %5391 = vmatprep.mubr.msk.f32.mxu0 %vm6197_vm12, %v6194_v40 }
 0x19d   :  { %5447 = vmatmul.mubr.f32.vlgmr.msra.gmra.mrb[2].mxu1 %v6696_v60 }
 0x19e   :  { %5831 = vmatpush3.bf16.msk.msra.mxu0 %vm6818_vm8, %v6196_v50  ;;  %5864 = vmatpush3.bf16.msk.msra.mxu1 %vm6838_vm9, %v6196_v50 }
 0x19f   :  { %5865 = vmatprep.subr.bf16.mxu1 %v6195_v46  ;;  %5457 = vmatprep.mubr.msk.f32.mxu1 %vm6197_vm12, %v6194_v40 }
 0x1a0   :  { %5868 = vmatprep.subr.bf16.mxu0 %v6195_v46 }
 0x1a1   :  { %5392 = vmatmul.mubr.f32.vlgmr.msra.gmra.mrb[2].mxu0 %v6623_v0 }
 0x1a2   :  { %5867 = vmatpush3.bf16.msk.msra.mxu1 %vm6874_vm14, %v6196_v50  ;;  %5870 = vmatpush3.bf16.msk.msra.mxu0 %vm7012_vm2, %v6196_v50  ;;  %vm7664_vm14 = vmmov %vm7659_vm7 }
 0x1a3   :  { %5871 = vmatprep.subr.bf16.mxu0 %v6195_v46  ;;  %5904 = vmatprep.subr.bf16.mxu1 %v6195_v46 }
 0x1a4   :  { %5468 = vmatprep.mubr.msk.f32.mxu0 %vm6197_vm12, %v6194_v40 }
 0x1a5   :  { %5458 = vmatmul.mubr.f32.vlgmr.msra.gmra.mrb[2].mxu1 %v6696_v60 }
 0x1a6   :  { %5873 = vmatpush3.bf16.msk.msra.mxu0 %vm7030_vm4, %v6196_v50  ;;  %5906 = vmatpush3.bf16.msk.msra.mxu1 %vm7042_vm3, %v6196_v50 }
 0x1a7   :  { %5874 = vmatprep.subr.bf16.mxu0 %v6195_v46  ;;  %5907 = vmatprep.subr.bf16.mxu1 %v6195_v46 }
 0x1a8   :  { %5534 = vmatprep.mubr.msk.f32.mxu1 %vm6197_vm12, %v6194_v40 }
 0x1aa   :  { %5909 = vmatpush3.bf16.msk.msra.mxu1 %vm7063_vm0, %v6196_v50 }
 0x1ab   :  { %5910 = vmatprep.subr.bf16.mxu1 %v6195_v46 }
 0x1d0   :  { %v88_v0 = vpop.xlane.xlu0 %87 }
 0x1d1   :  { %6130 = vlog2.f32 %v88_v0 }
 0x1d4   :  { %v91_v61 = vpop.xlane.xlu1 %90 }
 0x1d5   :  { %6132 = vlog2.f32 %v91_v61 }
 0x1d8   :  { %v94_v58 = vpop.xlane.xlu0 %93 }
 0x1d9   :  { %6134 = vlog2.f32 %v94_v58 }
 0x1db   :  { %v6131_v54 = vpop.eup %6130 }
 0x1dc   :  { %v107_v12 = vmul.f32 0.6931472, %v6131_v54  ;;  %v97_v55 = vpop.xlane.xlu1 %96 }
 0x1dd   :  { %6136 = vlog2.f32 %v97_v55 }
 0x1de   :  { %v118_v6 = vsub.f32 %v6429_v8, %v107_v12 }
 0x1df   :  { %v6133_v60 = vpop.eup %6132 }
 0x1e0   :  { %v2165_v15 = vsel %vm7659_vm7, %v118_v6, 0  ;;  %v109_v24 = vmul.f32 0.6931472, %v6133_v60  ;;  %vm3670_vm7 = vcmp.eq.s32.totalorder %v6319_v48, %v7153_v10  ;;  %v7263_v6 = vsub.f32 %v4942_v20, %v4942_v20 }
 0x1e1   :  { %v7075_v59 = vand.u32 4294901760, %v2165_v15 }
 0x1e2   :  { %v119_v2 = vsub.f32 %v6433_v51, %v109_v24 }
 0x1e3   :  { %v2237_v28 = vsub.f32 %v2165_v15, %v7075_v59 }
 0x1e4   :  { %v2670_v25 = vsel %vm7660_vm10, %v119_v2, 0  ;;  %vm4198_vm10 = vcmask 392192  }
 0x1e5   :  { %v7080_v7 = vand.u32 4294901760, %v2670_v25  ;;  %v2238_v57 = vand.u32 4294901760, %v2237_v28 }
 0x1e7   :  { %v7083_v52 = vsub.f32 %v2670_v25, %v7080_v7  ;;  %v2239_v13 = vsub.f32 %v2237_v28, %v2238_v57 }
 0x1e9   :  { %v2240_v8 = vand.u32 4294901760, %v2239_v13  ;;  %v2743_v19 = vand.u32 4294901760, %v7083_v52 }
 0x1eb   :  { %5469 = vmatmul.mubr.f32.vlgmr.msra.gmra.mrb[4].mxu0 %v2240_v8  ;;  %v2744_v47 = vsub.f32 %v7083_v52, %v2743_v19  ;;  %v3778_v8 = vand.u32 4294901760, %v7263_v6 }
 0x1ec   :  { %5876 = vmatpush3.bf16.msra.mxu0 %v6752_v49  ;;  %5479 = vmatprep.mubr.msk.f32.mxu0 %vm6197_vm12, %v6194_v40  ;;  %v7661_v49 = vpack.c.bf16 %v6650_v4, %v6636_v9  ;;  %v7663_v9 = vpack.c.bf16 %v6702_v41, %v6700_v62  ;;  %v6135_v4 = vpop.eup %6134 }
 0x1ed   :  { %5877 = vmatprep.subr.bf16.mxu0 %v6195_v46  ;;  %v2745_v51 = vand.u32 4294901760, %v2744_v47  ;;  %v6137_v62 = vpop.eup %6136 }
 0x1ee   :  { %v113_v26 = vmul.f32 0.6931472, %v6137_v62 }
 0x1ef   :  { %5535 = vmatmul.mubr.f32.vlgmr.msra.gmra.mrb[4].mxu1 %v2745_v51 }
 0x1f0   :  { %5879 = vmatpush3.bf16.msra.mxu0 %v6790_v22  ;;  %5912 = vmatpush3.bf16.msra.mxu1 %v6804_v14  ;;  %v7662_v22 = vpack.c.bf16 %v6692_v32, %v6690_v44  ;;  %v111_v44 = vmul.f32 0.6931472, %v6135_v4  ;;  %v7132_v32 = vld [vmem:[%s7600_s1 + $0x6] ss:$0 sm:$0xff]  ;;  %v3779_v4 = vsub.f32 %v7263_v6, %v3778_v8  ;;  %s6198_s1 = smov 16  }
 0x1f1   :  { %5880 = vmatprep.subr.bf16.mxu0 %v6195_v46  ;;  %5913 = vmatprep.subr.bf16.mxu1 %v6195_v46  ;;  %vm3162_vm11 = vcmp.eq.s32.totalorder %v6293_v37, %v7132_v32  ;;  %vm3163_vm8 = vcmp.eq.s32.totalorder %v6296_v38, %v7132_v32  ;;  %vm3164_vm9 = vcmp.eq.s32.totalorder %v6310_v45, %v7132_v32 }
 0x1f2   :  { %5545 = vmatprep.mubr.msk.f32.mxu1 %vm6197_vm12, %v6194_v40  ;;  %v120_v41 = vsub.f32 %v6437_v18, %v111_v44  ;;  %v4923_v18 = vsel %vm3162_vm11, 1.0, %v6194_v40  ;;  %v4924_v14 = vsel %vm3163_vm8, 1.0, %v6194_v40  ;;  %vm3165_vm13 = vcmp.eq.s32.totalorder %v6319_v48, %v7132_v32 }
 0x1f3   :  { %5480 = vmatmul.mubr.f32.vlgmr.msra.gmra.mrb[4].mxu0 %v7075_v59  ;;  %v7185_v39 = vsub.f32 %v4924_v14, %v4924_v14  ;;  %v4926_v42 = vsel %vm3165_vm13, 1.0, %v6194_v40  ;;  %v3780_v48 = vand.u32 4294901760, %v3779_v4 }
 0x1f4   :  { %5882 = vmatpush3.bf16.msra.mxu0 %v7661_v49  ;;  %5915 = vmatpush3.bf16.msra.mxu1 %v6828_v31  ;;  %v121_v31 = vsub.f32 %v6445_v27, %v113_v26  ;;  %v4925_v27 = vsel %vm3164_vm9, 1.0, %v6194_v40  ;;  %v7219_v43 = vsub.f32 %v4926_v42, %v4926_v42 }
 0x1f5   :  { %5883 = vmatprep.subr.bf16.mxu0 %v6195_v46  ;;  %5916 = vmatprep.subr.bf16.mxu1 %v6195_v46  ;;  %v7217_v56 = vsub.f32 %v4925_v27, %v4925_v27  ;;  %v3266_v36 = vand.u32 4294901760, %v7185_v39 }
 0x1f6   :  { %5490 = vmatprep.mubr.msk.f32.mxu0 %vm6197_vm12, %v6194_v40  ;;  %v3680_v53 = vsel %vm7665_vm5, %v121_v31, 0  ;;  %v3280_v12 = vand.u32 4294901760, %v7219_v43 }
 0x1f7   :  { %5546 = vmatmul.mubr.f32.vlgmr.msra.gmra.mrb[4].mxu1 %v7080_v7  ;;  %v7234_v11 = vand.u32 4294901760, %v3680_v53  ;;  %v3267_v61 = vsub.f32 %v7185_v39, %v3266_v36  ;;  %v3273_v54 = vand.u32 4294901760, %v7217_v56 }
 0x1f8   :  { %5885 = vmatpush3.bf16.msra.mxu0 %v7662_v22  ;;  %5918 = vmatpush3.bf16.msra.mxu1 %v7663_v9 }
 0x1f9   :  { %5886 = vmatprep.subr.bf16.mxu0 %v6195_v46  ;;  %5919 = vmatprep.subr.bf16.mxu1 %v6195_v46  ;;  %v7270_v2 = vsub.f32 %v3680_v53, %v7234_v11  ;;  %v3268_v25 = vand.u32 4294901760, %v3267_v61 }
 0x1fa   :  { %5556 = vmatprep.mubr.msk.f32.mxu1 %vm6197_vm12, %v6194_v40 }
 0x1fb   :  { %5491 = vmatmul.mubr.f32.vlgmr.msra.gmra.mrb[4].mxu0 %v2237_v28  ;;  %v3753_v58 = vand.u32 4294901760, %v7270_v2 }
 0x1fc   :  { %5888 = vmatpush3.bf16.msk.msra.mxu0 %vm7012_vm2, %v6196_v50  ;;  %5921 = vmatpush3.bf16.msra.mxu1 %v5920_v33  ;;  %v3175_v33 = vsel %vm7664_vm14, %v120_v41, 0  ;;  %vm4206_vm14 = vcmask 916480  }
 0x1fd   :  { %5889 = vmatprep.subr.bf16.mxu0 %v6195_v46  ;;  %5922 = vmatprep.subr.bf16.mxu1 %v6195_v46  ;;  %v7197_v63 = vand.u32 4294901760, %v3175_v33  ;;  %v3754_v62 = vsub.f32 %v7270_v2, %v3753_v58 }
 0x1fe   :  { %5501 = vmatprep.mubr.msk.f32.mxu0 %vm6197_vm12, %v6194_v40 }
 0x1ff   :  { %5557 = vmatmul.mubr.f32.vlgmr.msra.gmra.mrb[4].mxu1 %v7083_v52  ;;  %v7232_v5 = vsub.f32 %v3175_v33, %v7197_v63  ;;  %v3281_v52 = vsub.f32 %v7219_v43, %v3280_v12  ;;  %v3755_v10 = vand.u32 4294901760, %v3754_v62  ;;  %v5956_v33 = vpack.c.bf16 %v7219_v43, %v7217_v56 }
 0x200   :  { %5891 = vmatpush3.bf16.msk.msra.mxu0 %vm7030_vm4, %v6196_v50  ;;  %5924 = vmatpush3.bf16.msk.msra.mxu1 %vm7042_vm3, %v6196_v50 }
 0x201   :  { %5892 = vmatprep.subr.bf16.mxu0 %v6195_v46  ;;  %5925 = vmatprep.subr.bf16.mxu1 %v6195_v46  ;;  %v3248_v35 = vand.u32 4294901760, %v7232_v5  ;;  %v3282_v22 = vand.u32 4294901760, %v3281_v52  ;;  %v7475_v52 = vld [vmem:[%s7601_s3] sm:$0x1] }
 0x202   :  { %5567 = vmatprep.mubr.msk.f32.mxu1 %vm6197_vm12, %v6194_v40 }
 0x203   :  { %5502 = vmatmul.mubr.f32.vlgmr.msra.gmra.mrb[4].mxu0 %v2238_v57  ;;  %v3274_v57 = vsub.f32 %v7217_v56, %v3273_v54  ;;  %v3249_v51 = vsub.f32 %v7232_v5, %v3248_v35 }
 0x204   :  { %5894 = vmatpush3.bf16.msra.mxu0 %v6907_v16  ;;  %5927 = vmatpush3.bf16.msk.msra.mxu1 %vm7063_vm0, %v6196_v50  ;;  %v7183_v16 = vsub.f32 %v4923_v18, %v4923_v18 }
 0x205   :  { %5895 = vmatprep.subr.bf16.mxu0 %v6195_v46  ;;  %5928 = vmatprep.subr.bf16.mxu1 %v6195_v46  ;;  %v3275_v49 = vand.u32 4294901760, %v3274_v57  ;;  %v3250_v44 = vand.u32 4294901760, %v3249_v51 }
 0x206   :  { %5512 = vmatprep.mubr.msk.f32.mxu0 %vm6197_vm12, %v6194_v40  ;;  %v3259_v3 = vand.u32 4294901760, %v7183_v16  ;;  %v5953_v18 = vpack.c.bf16 %v7185_v39, %v7183_v16 }
 0x207   :  { %5568 = vmatmul.mubr.f32.vlgmr.msra.gmra.mrb[4].mxu1 %v2743_v19  ;;  %v5950_v45 = vpack.c.bf16 %v3282_v22, %v3275_v49 }
 0x208   :  { %5897 = vmatpush3.bf16.msra.mxu0 %v6918_v1  ;;  %5930 = vmatpush3.bf16.msra.mxu1 %v6926_v23  ;;  %v4940_v1 = vsel %vm3667_vm15, 1.0, %v6194_v40  ;;  %v4941_v23 = vsel %vm3668_vm1, 1.0, %v6194_v40  ;;  %v3260_v0 = vsub.f32 %v7183_v16, %v3259_v3  ;;  %v5965_v42 = vpack.c.bf16 %v3266_v36, %v3259_v3 }
 0x209   :  { %5898 = vmatprep.subr.bf16.mxu0 %v6195_v46  ;;  %5931 = vmatprep.subr.bf16.mxu1 %v6195_v46  ;;  %v7227_v21 = vsub.f32 %v4940_v1, %v4940_v1  ;;  %v7229_v34 = vsub.f32 %v4941_v23, %v4941_v23  ;;  %v5968_v16 = vpack.c.bf16 %v3280_v12, %v3273_v54 }
 0x20a   :  { %5578 = vmatprep.mubr.msk.f32.mxu1 %vm6197_vm12, %v6194_v40  ;;  %v3261_v28 = vand.u32 4294901760, %v3260_v0 }
 0x20b   :  { %5513 = vmatmul.mubr.f32.vlgmr.msra.gmra.mrb[4].mxu0 %v7075_v59  ;;  %v3764_v15 = vand.u32 4294901760, %v7227_v21  ;;  %v3771_v24 = vand.u32 4294901760, %v7229_v34  ;;  %v5989_v31 = vpack.c.bf16 %v7229_v34, %v7227_v21 }
 0x20c   :  { %5900 = vmatpush3.bf16.msk.msra.mxu0 %vm7012_vm2, %v6196_v50  ;;  %5933 = vmatpush3.bf16.msra.mxu1 %v6940_v30  ;;  %v4943_v30 = vsel %vm3670_vm7, 1.0, %v6194_v40  ;;  %vm7280_vm2 = vmpackc.low %vm3163_vm8, %vm3162_vm11  ;;  %v5947_v55 = vpack.c.bf16 %v3268_v25, %v3261_v28  ;;  %vm4200_vm11 = vcmask 523264  }
 0x20d   :  { %5901 = vmatprep.subr.bf16.mxu0 %v6195_v46  ;;  %5934 = vmatprep.subr.bf16.mxu1 %v6195_v46  ;;  %v7265_v60 = vsub.f32 %v4943_v30, %v4943_v30  ;;  %v3765_v13 = vsub.f32 %v7227_v21, %v3764_v15  ;;  %v3772_v29 = vsub.f32 %v7229_v34, %v3771_v24  ;;  %vm7674_vm8 = vmmov %vm7665_vm5  ;;  %vm4232_vm5 = vcmask 7168  }
 0x20e   :  { %5523 = vmatprep.mubr.msk.f32.mxu0 %vm6197_vm12, %v6194_v40  ;;  %v6001_v39 = vpack.c.bf16 %v3771_v24, %v3764_v15 }
 0x20f   :  { %5579 = vmatmul.mubr.f32.vlgmr.msra.gmra.mrb[4].mxu1 %v7080_v7  ;;  %v3785_v19 = vand.u32 4294901760, %v7265_v60  ;;  %v3766_v38 = vand.u32 4294901760, %v3765_v13  ;;  %v3773_v9 = vand.u32 4294901760, %v3772_v29  ;;  %v5992_v27 = vpack.c.bf16 %v7265_v60, %v7263_v6 }
 0x210   :  { %5903 = vmatpush3.bf16.msk.msra.mxu0 %vm7030_vm4, %v6196_v50  ;;  %5936 = vmatpush3.bf16.msk.msra.mxu1 %vm7042_vm3, %v6196_v50  ;;  %vm7306_vm4 = vmpackc.low %vm3165_vm13, %vm3164_vm9  ;;  %vm4202_vm9 = vcmask 654336   ;;  %vm4204_vm13 = vcmask 785408  }
 0x211   :  { %5937 = vmatprep.subr.bf16.mxu1 %v6195_v46  ;;  %5940 = vmatprep.subr.bf16.mxu0 %v6195_v46  ;;  %vm7326_vm3 = vmpackc.low %vm3668_vm1, %vm3667_vm15  ;;  %v5983_v41 = vpack.c.bf16 %v3773_v9, %v3766_v38  ;;  %v6004_v1 = vpack.c.bf16 %v3785_v19, %v3778_v8  ;;  %vm4217_vm15 = vcmp.lt.s32.totalorder %v7475_v52, 2  ;;  %v7489_v8 = vld [vmem:[%s7603_s2] sm:$0x1]  ;;  %vm4238_vm1 = vcmask 15360  }
 0x212   :  { %5589 = vmatprep.mubr.msk.f32.mxu1 %vm6197_vm12, %v6194_v40 }
 0x213   :  { %5524 = vmatmul.mubr.f32.vlgmr.msra.gmra.mrb[4].mxu0 %v7075_v59 }
 0x214   :  { %5939 = vmatpush3.bf16.msk.msra.mxu1 %vm7063_vm0, %v6196_v50  ;;  %5942 = vmatpush3.bf16.msk.msra.mxu0 %vm7280_vm2, %v6196_v50  ;;  %vm7357_vm0 = vmpackc.low %vm3670_vm7, %vm3669_vm6  ;;  %vm4210_vm6 = vcmp.ge.s32.totalorder %v7475_v52, 1  ;;  %vm4212_vm7 = vcmp.ne.s32.totalorder %v7489_v8, 0 }
 0x215   :  { %5943 = vmatprep.subr.bf16.mxu0 %v6195_v46  ;;  %5976 = vmatprep.subr.bf16.mxu1 %v6195_v46 }
 0x216   :  { %5600 = vmatprep.mubr.msk.f32.mxu0 %vm6197_vm12, %v6194_v40 }
 0x217   :  { %5590 = vmatmul.mubr.f32.vlgmr.msra.gmra.mrb[4].mxu1 %v7080_v7  ;;  %v3786_v7 = vsub.f32 %v7265_v60, %v3785_v19 }
 0x218   :  { %5945 = vmatpush3.bf16.msk.msra.mxu0 %vm7306_vm4, %v6196_v50  ;;  %5978 = vmatpush3.bf16.msk.msra.mxu1 %vm7326_vm3, %v6196_v50 }
 0x219   :  { %5946 = vmatprep.subr.bf16.mxu0 %v6195_v46  ;;  %5979 = vmatprep.subr.bf16.mxu1 %v6195_v46  ;;  %v3787_v26 = vand.u32 4294901760, %v3786_v7 }
 0x21a   :  { %5666 = vmatprep.mubr.msk.f32.mxu1 %vm6197_vm12, %v6194_v40 }
 0x21b   :  { %5601 = vmatmul.mubr.f32.vlgmr.msra.gmra.mrb[6].mxu0 %v3250_v44  ;;  %v5986_v14 = vpack.c.bf16 %v3787_v26, %v3780_v48 }
 0x21c   :  { %5948 = vmatpush3.bf16.msra.mxu0 %v5947_v55  ;;  %5981 = vmatpush3.bf16.msk.msra.mxu1 %vm7357_vm0, %v6196_v50 }
 0x21d   :  { %5949 = vmatprep.subr.bf16.mxu0 %v6195_v46  ;;  %5982 = vmatprep.subr.bf16.mxu1 %v6195_v46 }
 0x21e   :  { %5611 = vmatprep.mubr.msk.f32.mxu0 %vm6197_vm12, %v6194_v40 }
 0x21f   :  { %5667 = vmatmul.mubr.f32.vlgmr.msra.gmra.mrb[6].mxu1 %v3755_v10 }
 0x220   :  { %5951 = vmatpush3.bf16.msra.mxu0 %v5950_v45  ;;  %5984 = vmatpush3.bf16.msra.mxu1 %v5983_v41 }
 0x221   :  { %5952 = vmatprep.subr.bf16.mxu0 %v6195_v46  ;;  %5985 = vmatprep.subr.bf16.mxu1 %v6195_v46 }
 0x222   :  { %5677 = vmatprep.mubr.msk.f32.mxu1 %vm6197_vm12, %v6194_v40 }
 0x223   :  { %5612 = vmatmul.mubr.f32.vlgmr.msra.gmra.mrb[6].mxu0 %v7197_v63 }
 0x224   :  { %5954 = vmatpush3.bf16.msra.mxu0 %v5953_v18  ;;  %5987 = vmatpush3.bf16.msra.mxu1 %v5986_v14 }
 0x225   :  { %5955 = vmatprep.subr.bf16.mxu0 %v6195_v46  ;;  %5988 = vmatprep.subr.bf16.mxu1 %v6195_v46 }
 0x226   :  { %5622 = vmatprep.mubr.msk.f32.mxu0 %vm6197_vm12, %v6194_v40 }
 0x227   :  { %5678 = vmatmul.mubr.f32.vlgmr.msra.gmra.mrb[6].mxu1 %v7234_v11 }
 0x228   :  { %5957 = vmatpush3.bf16.msra.mxu0 %v5956_v33  ;;  %5990 = vmatpush3.bf16.msra.mxu1 %v5989_v31 }
 0x229   :  { %5958 = vmatprep.subr.bf16.mxu0 %v6195_v46  ;;  %5991 = vmatprep.subr.bf16.mxu1 %v6195_v46 }
 0x22a   :  { %5688 = vmatprep.mubr.msk.f32.mxu1 %vm6197_vm12, %v6194_v40 }
 0x22b   :  { %5623 = vmatmul.mubr.f32.vlgmr.msra.gmra.mrb[6].mxu0 %v7232_v5 }
 0x22c   :  { %5960 = vmatpush3.bf16.msk.msra.mxu0 %vm7280_vm2, %v6196_v50  ;;  %5993 = vmatpush3.bf16.msra.mxu1 %v5992_v27 }
 0x22d   :  { %5961 = vmatprep.subr.bf16.mxu0 %v6195_v46  ;;  %5994 = vmatprep.subr.bf16.mxu1 %v6195_v46 }
 0x22e   :  { %5633 = vmatprep.mubr.msk.f32.mxu0 %vm6197_vm12, %v6194_v40 }
 0x22f   :  { %5689 = vmatmul.mubr.f32.vlgmr.msra.gmra.mrb[6].mxu1 %v7270_v2 }
 0x230   :  { %5963 = vmatpush3.bf16.msk.msra.mxu0 %vm7306_vm4, %v6196_v50  ;;  %5996 = vmatpush3.bf16.msk.msra.mxu1 %vm7326_vm3, %v6196_v50 }
 0x231   :  { %5964 = vmatprep.subr.bf16.mxu0 %v6195_v46  ;;  %5997 = vmatprep.subr.bf16.mxu1 %v6195_v46 }
 0x232   :  { %5699 = vmatprep.mubr.msk.f32.mxu1 %vm6197_vm12, %v6194_v40 }
 0x233   :  { %5634 = vmatmul.mubr.f32.vlgmr.msra.gmra.mrb[6].mxu0 %v3248_v35 }
 0x234   :  { %5966 = vmatpush3.bf16.msra.mxu0 %v5965_v42  ;;  %5999 = vmatpush3.bf16.msk.msra.mxu1 %vm7357_vm0, %v6196_v50 }
 0x235   :  { %5967 = vmatprep.subr.bf16.mxu0 %v6195_v46  ;;  %6000 = vmatprep.subr.bf16.mxu1 %v6195_v46 }
 0x236   :  { %5644 = vmatprep.mubr.msk.f32.mxu0 %vm6197_vm12, %v6194_v40 }
 0x237   :  { %5700 = vmatmul.mubr.f32.vlgmr.msra.gmra.mrb[6].mxu1 %v3753_v58 }
 0x238   :  { %5969 = vmatpush3.bf16.msra.mxu0 %v5968_v16  ;;  %6002 = vmatpush3.bf16.msra.mxu1 %v6001_v39  ;;  %v6207_v16 = vmov 1966171168  }
 0x239   :  { %5970 = vmatprep.subr.bf16.mxu0 %v6195_v46  ;;  %6003 = vmatprep.subr.bf16.mxu1 %v6195_v46  ;;  %v4340_v39 = vunpack.c.l.s4 %v6207_v16 }
 0x23a   :  { %5710 = vmatprep.mubr.msk.f32.mxu1 %vm6197_vm12, %v6194_v40 }
 0x23b   :  { %5645 = vmatmul.mubr.f32.vlgmr.msra.gmra.mrb[6].mxu0 %v7197_v63 }
 0x23c   :  { %5972 = vmatpush3.bf16.msk.msra.mxu0 %vm7280_vm2, %v6196_v50  ;;  %6005 = vmatpush3.bf16.msra.mxu1 %v6004_v1  ;;  %v7503_v1 = vsub.s32 0, %v6293_v37 }
 0x23d   :  { %5973 = vmatprep.subr.bf16.mxu0 %v6195_v46  ;;  %6006 = vmatprep.subr.bf16.mxu1 %v6195_v46 }
 0x23e   :  { %5655 = vmatprep.mubr.msk.f32.mxu0 %vm6197_vm12, %v6194_v40 }
 0x23f   :  { %5711 = vmatmul.mubr.f32.vlgmr.msra.gmra.mrb[6].mxu1 %v7234_v11 }
 0x240   :  { %5975 = vmatpush3.bf16.msk.msra.mxu0 %vm7306_vm4, %v6196_v50  ;;  %6008 = vmatpush3.bf16.msk.msra.mxu1 %vm7326_vm3, %v6196_v50 }
 0x241   :  { %6009 = vmatprep.subr.bf16.mxu1 %v6195_v46  ;;  %5721 = vmatprep.mubr.msk.f32.mxu1 %vm6197_vm12, %v6194_v40  ;;  %vm4195_vm12 = vcmask 130048  }
 0x243   :  { %5656 = vmatmul.mubr.f32.vlgmr.msra.gmra.mrb[6].mxu0 %v7197_v63 }
 0x244   :  { %6011 = vmatpush3.bf16.msk.msra.mxu1 %vm7357_vm0, %v6196_v50  ;;  %v628_v23 = vpop.f32.mrb[0].mxu0 }
 0x245   :  { %v5261_v53 = vpop.f32.mrb[1].mxu0 }
 0x247   :  { %5722 = vmatmul.mubr.f32.vlgmr.msra.gmra.mrb[6].mxu1 %v7234_v11 }
 0x248   :  { %v1133_v56 = vpop.f32.mrb[0].mxu1 }
 0x249   :  { %v5327_v43 = vpop.f32.mrb[1].mxu1  ;;  %4168 = vrot.lane.b32.xlu0 %v1133_v56, %s6198_s1 }
 0x24a   :  { %v4341_v43 = vunpack.c.0.s8 %v4340_v39 }
 0x274   :  { %v1638_v3 = vpop.f32.mrb[2].mxu0 }
 0x275   :  { %4172 = vrot.lane.b32.xlu1 %v1638_v3, %s6199_s20  ;;  %v5393_v46 = vpop.f32.mrb[3].mxu0 }
 0x278   :  { %v2143_v36 = vpop.f32.mrb[2].mxu1 }
 0x279   :  { %v5459_v40 = vpop.f32.mrb[3].mxu1  ;;  %4176 = vrot.lane.b32.xlu1 %v2143_v36, %s6200_s21 }
 0x2bb   :  { %v4169_v54 = vpop.permute.xlu0 %4168 }
 0x2bc   :  { %v4196_v6 = vsel %vm4195_vm12, %v628_v23, %v4169_v54 }
 0x2e6   :  { %v2648_v63 = vpop.f32.mrb[4].mxu0 }
 0x2e7   :  { %4180 = vrot.lane.b32.xlu1 %v2648_v63, %s6201_s22  ;;  %v5525_v50 = vpop.f32.mrb[5].mxu0  ;;  %v4173_v0 = vpop.permute.xlu1 %4172 }
 0x2e8   :  { %v4197_v60 = vsel %vm7674_vm8, %v4196_v6, %v4173_v0  ;;  %v7514_v50 = vsub.s32 %v4341_v43, %v6293_v37 }
 0x2ea   :  { %v3153_v21 = vpop.f32.mrb[4].mxu1 }
 0x2eb   :  { %v5591_v34 = vpop.f32.mrb[5].mxu1  ;;  %4184 = vrot.lane.b32.xlu0 %v3153_v21, %s6202_s23  ;;  %v4177_v61 = vpop.permute.xlu1 %4176 }
 0x2ec   :  { %v4199_v24 = vsel %vm4198_vm10, %v4197_v60, %v4177_v61 }
 0x316   :  { %v3658_v5 = vpop.f32.mrb[6].mxu0 }
 0x317   :  { %4188 = vrot.lane.b32.xlu1 %v3658_v5, %s6203_s24  ;;  %v5657_v11 = vpop.f32.mrb[7].mxu0 }
 0x31a   :  { %v4163_v20 = vpop.f32.mrb[6].mxu1 }
 0x31b   :  { %v5723_v30 = vpop.f32.mrb[7].mxu1  ;;  %4192 = vrot.lane.b32.xlu0 %v4163_v20, %s6204_s25 }
 0x359   :  { %v4181_v12 = vpop.permute.xlu1 %4180 }
 0x35a   :  { %v4201_v17 = vsel %vm4200_vm11, %v4199_v24, %v4181_v12 }
 0x35d   :  { %v4185_v15 = vpop.permute.xlu0 %4184 }
 0x35e   :  { %v4203_v35 = vsel %vm4202_vm9, %v4201_v17, %v4185_v15 }
 0x389   :  { %v4189_v2 = vpop.permute.xlu1 %4188 }
 0x38a   :  { %v4205_v28 = vsel %vm4204_vm13, %v4203_v35, %v4189_v2 }
 0x38d   :  { %v4193_v25 = vpop.permute.xlu0 %4192 }
 0x38e   :  { %v7469_v57 = vsel %vm4206_vm14, %v4205_v28, %v4193_v25 }
 0x38f   :  { %4208 = vst [vmem:[#allocation2] sm:$0xff] %v7469_v57 }
 0x396   :  { %v4218_v59 = vld [vmem:[#allocation2] sm:$0x1] }
 0x397   :  { %v4219_v13 = vsel %vm4217_vm15, %v4218_v59, -1e+30 }
 0x398   :  { %4220 = vst [vmem:[%s7602_s4] sm:$0x1] %v4219_v13 }
 0x39f   :  { %v4222_v29 = vld [vmem:[%s7602_s4] sm:$0x1] }
 0x3a0   :  { %4273 = vrot.lane.b32.xlu0 %v4222_v29, %s6205_s6  ;;  %4268 = vrot.lane.b32.xlu1 %v4222_v29, %s6206_s0 }
 0x412   :  { %v4274_v19 = vpop.permute.xlu0 %4273  ;;  %v4269_v47 = vpop.permute.xlu1 %4268 }
 0x413   :  { %v4276_v51 = vsel %vm4238_vm1, -1e+30, %v4274_v19  ;;  %v4271_v58 = vsel %vm4232_vm5, -1e+30, %v4269_v47 }
 0x414   :  { %v4272_v55 = vsel %vm4210_vm6, %v4271_v58, -1e+30  ;;  %v4277_v22 = vsel %vm4212_vm7, %v4276_v51, -1e+30 }
 0x415   :  { %v4278_v49 = vmax.f32 %v4222_v29, %v4272_v55 }
 0x417   :  { %v4279_v38 = vmax.f32 %v4278_v49, %v4277_v22 }
 0x419   :  { %v4280_v9 = vsub.f32 %v4222_v29, %v4279_v38  ;;  %v4283_v4 = vsub.f32 %v4272_v55, %v4279_v38  ;;  %v4287_v7 = vsub.f32 %v4277_v22, %v4279_v38 }
 0x41b   :  { %v4281_v44 = vmul.f32 1.442695, %v4280_v9  ;;  %v4284_v32 = vmul.f32 1.442695, %v4283_v4  ;;  %v4288_v62 = vmul.f32 1.442695, %v4287_v7 }
 0x41d   :  { %6138 = vpow2.f32 %v4281_v44 }
 0x41e   :  { %6140 = vpow2.f32 %v4284_v32 }
 0x41f   :  { %6142 = vpow2.f32 %v4288_v62 }
 0x427   :  { %v6139_v45 = vpop.eup %6138 }
 0x428   :  { %v6141_v41 = vpop.eup %6140 }
 0x429   :  { %v4286_v48 = vadd.f32 %v6141_v41, %v6139_v45  ;;  %v6143_v26 = vpop.eup %6142 }
 0x42b   :  { %v4290_v10 = vadd.f32 %v6143_v26, %v4286_v48 }
 0x42d   :  { %6144 = vlog2.f32 %v4290_v10 }
 0x437   :  { %v6145_v18 = vpop.eup %6144 }
 0x438   :  { %v4292_v14 = vmul.f32 0.6931472, %v6145_v18 }
 0x43a   :  { %v4293_v33 = vadd.f32 %v4292_v14, %v4279_v38 }
 0x43c   :  { %v4295_v31 = vrot.slane %v4293_v33, 7 }
 0x43e   :  { %v4297_v27 = vadd.f32 %v4295_v31, %v7469_v57 }
 0x440   :  { %v4310_v42 = vrot.slane %v4297_v27, 1 }
 0x442   :  { %4316 = vrot.lane.b32.xlu0 %v4310_v42, %s6205_s6  ;;  %4311 = vrot.lane.b32.xlu1 %v4310_v42, %s6206_s0 }
 0x4b4   :  { %v4317_v23 = vpop.permute.xlu0 %4316  ;;  %v4312_v53 = vpop.permute.xlu1 %4311 }
 0x4b5   :  { %v4319_v56 = vsel %vm4238_vm1, -1e+30, %v4317_v23  ;;  %v4314_v3 = vsel %vm4232_vm5, -1e+30, %v4312_v53 }
 0x4b6   :  { %v4320_v46 = vsel %vm4212_vm7, %v4319_v56, -1e+30  ;;  %v4315_v36 = vsel %vm4210_vm6, %v4314_v3, -1e+30 }
 0x4b7   :  { %v4325_v40 = vrot.slane %v4315_v36, %v7503_v1  ;;  %v4332_v63 = vrot.slane %v4320_v46, %v7503_v1 }
 0x4b9   :  { %v4327_v21 = vmax.f32 %v4297_v27, %v4325_v40 }
 0x4bb   :  { %v4334_v34 = vmax.f32 %v4327_v21, %v4332_v63 }
 0x4bd   :  { %v4345_v5 = vrot.slane %v4334_v34, %v7514_v50  ;;  %v4335_v20 = vsub.f32 %v4297_v27, %v4334_v34 }
 0x4bf   :  { %v4346_v11 = vcombine.high %v4345_v5, %v4345_v5  ;;  %v4336_v54 = vmul.f32 1.442695, %v4335_v20 }
 0x4c1   :  { %v4353_v30 = vrot.slane %v4346_v11, %v7514_v50 }
 0x4c3   :  { %v4355_v0 = vsub.f32 %v4315_v36, %v4353_v30  ;;  %v4365_v61 = vsub.f32 %v4320_v46, %v4353_v30 }
 0x4c5   :  { %v4356_v12 = vmul.f32 1.442695, %v4355_v0  ;;  %v4366_v6 = vmul.f32 1.442695, %v4365_v61 }
 0x4c7   :  { %6146 = vpow2.f32 %v4356_v12 }
 0x4c8   :  { %6148 = vpow2.f32 %v4366_v6 }
 0x4c9   :  { %6150 = vpow2.f32 %v4336_v54 }
 0x4d1   :  { %v6147_v60 = vpop.eup %6146 }
 0x4d2   :  { %v6149_v15 = vpop.eup %6148  ;;  %v4362_v37 = vrot.slane %v6147_v60, %v7503_v1 }
 0x4d3   :  { %v6151_v24 = vpop.eup %6150  ;;  %v4372_v17 = vrot.slane %v6149_v15, %v7503_v1 }
 0x4d4   :  { %v4364_v2 = vadd.f32 %v6151_v24, %v4362_v37 }
 0x4d6   :  { %v4374_v35 = vadd.f32 %v4372_v17, %v4364_v2 }
 0x4d8   :  { %6152 = vlog2.f32 %v4374_v35 }
 0x4e2   :  { %v6153_v28 = vpop.eup %6152 }
 0x4e3   :  { %v4376_v25 = vmul.f32 0.6931472, %v6153_v28 }
 0x4e5   :  { %v4377_v59 = vadd.f32 %v4376_v25, %v4334_v34 }
 0x4e7   :  { %v4379_v13 = vrot.slane %v4377_v59, 7 }
 0x4e9   :  { %v4381_v29 = vadd.f32 %v4379_v13, %v7469_v57 }
 0x4eb   :  { %v4394_v19 = vrot.slane %v4381_v29, 2 }
 0x4ed   :  { %4400 = vrot.lane.b32.xlu0 %v4394_v19, %s6205_s6  ;;  %4395 = vrot.lane.b32.xlu1 %v4394_v19, %s6206_s0 }
 0x55f   :  { %v4401_v47 = vpop.permute.xlu0 %4400  ;;  %v4396_v51 = vpop.permute.xlu1 %4395 }
 0x560   :  { %v4403_v58 = vsel %vm4238_vm1, -1e+30, %v4401_v47  ;;  %v4398_v55 = vsel %vm4232_vm5, -1e+30, %v4396_v51 }
 0x561   :  { %v4404_v49 = vsel %vm4212_vm7, %v4403_v58, -1e+30  ;;  %v4399_v22 = vsel %vm4210_vm6, %v4398_v55, -1e+30 }
 0x562   :  { %v4409_v38 = vrot.slane %v4399_v22, %v7503_v1  ;;  %v4416_v9 = vrot.slane %v4404_v49, %v7503_v1 }
 0x564   :  { %v4411_v4 = vmax.f32 %v4381_v29, %v4409_v38 }
 0x566   :  { %v4418_v7 = vmax.f32 %v4411_v4, %v4416_v9 }
 0x568   :  { %v4429_v44 = vrot.slane %v4418_v7, %v7514_v50  ;;  %v4419_v62 = vsub.f32 %v4381_v29, %v4418_v7 }
 0x56a   :  { %v4436_v32 = vrot.slane %v4429_v44, %v7514_v50  ;;  %v4420_v26 = vmul.f32 1.442695, %v4419_v62 }
 0x56c   :  { %v4437_v45 = vcombine.high %v4436_v32, %v4436_v32 }
 0x56e   :  { %v4439_v41 = vsub.f32 %v4399_v22, %v4437_v45  ;;  %v4449_v48 = vsub.f32 %v4404_v49, %v4437_v45 }
 0x570   :  { %v4440_v10 = vmul.f32 1.442695, %v4439_v41  ;;  %v4450_v18 = vmul.f32 1.442695, %v4449_v48 }
 0x572   :  { %6154 = vpow2.f32 %v4440_v10 }
 0x573   :  { %6156 = vpow2.f32 %v4450_v18 }
 0x574   :  { %6158 = vpow2.f32 %v4420_v26 }
 0x57c   :  { %v6155_v14 = vpop.eup %6154 }
 0x57d   :  { %v6157_v33 = vpop.eup %6156  ;;  %v4446_v31 = vrot.slane %v6155_v14, %v7503_v1 }
 0x57e   :  { %v6159_v27 = vpop.eup %6158  ;;  %v4456_v16 = vrot.slane %v6157_v33, %v7503_v1 }
 0x57f   :  { %v4448_v42 = vadd.f32 %v6159_v27, %v4446_v31 }
 0x581   :  { %v4458_v39 = vadd.f32 %v4456_v16, %v4448_v42 }
 0x583   :  { %6160 = vlog2.f32 %v4458_v39 }
 0x58d   :  { %v6161_v23 = vpop.eup %6160 }
 0x58e   :  { %v4460_v53 = vmul.f32 0.6931472, %v6161_v23 }
 0x590   :  { %v4461_v56 = vadd.f32 %v4460_v53, %v4418_v7 }
 0x592   :  { %v4463_v43 = vrot.slane %v4461_v56, 7 }
 0x594   :  { %v4465_v3 = vadd.f32 %v4463_v43, %v7469_v57 }
 0x596   :  { %v4478_v46 = vrot.slane %v4465_v3, 3 }
 0x598   :  { %4484 = vrot.lane.b32.xlu0 %v4478_v46, %s6205_s6  ;;  %4479 = vrot.lane.b32.xlu1 %v4478_v46, %s6206_s0 }
 0x60a   :  { %v4485_v36 = vpop.permute.xlu0 %4484  ;;  %v4480_v40 = vpop.permute.xlu1 %4479 }
 0x60b   :  { %v4487_v63 = vsel %vm4238_vm1, -1e+30, %v4485_v36  ;;  %v4482_v21 = vsel %vm4232_vm5, -1e+30, %v4480_v40 }
 0x60c   :  { %v4488_v34 = vsel %vm4212_vm7, %v4487_v63, -1e+30  ;;  %v4483_v5 = vsel %vm4210_vm6, %v4482_v21, -1e+30 }
 0x60d   :  { %v4493_v11 = vrot.slane %v4483_v5, %v7503_v1  ;;  %v4500_v20 = vrot.slane %v4488_v34, %v7503_v1 }
 0x60f   :  { %v4495_v30 = vmax.f32 %v4465_v3, %v4493_v11 }
 0x611   :  { %v4502_v0 = vmax.f32 %v4495_v30, %v4500_v20 }
 0x613   :  { %v4513_v61 = vrot.slane %v4502_v0, %v7514_v50  ;;  %v4503_v6 = vsub.f32 %v4465_v3, %v4502_v0 }
 0x615   :  { %v4514_v54 = vcombine.high %v4513_v61, %v4513_v61  ;;  %v4504_v24 = vmul.f32 1.442695, %v4503_v6 }
 0x617   :  { %v4521_v12 = vrot.slane %v4514_v54, %v7514_v50 }
 0x619   :  { %v4522_v60 = vcombine.high %v4521_v12, %v4521_v12 }
 0x61b   :  { %v4524_v15 = vsub.f32 %v4483_v5, %v4522_v60  ;;  %v4534_v37 = vsub.f32 %v4488_v34, %v4522_v60 }
 0x61d   :  { %v4525_v2 = vmul.f32 1.442695, %v4524_v15  ;;  %v4535_v17 = vmul.f32 1.442695, %v4534_v37 }
 0x61f   :  { %6162 = vpow2.f32 %v4525_v2 }
 0x620   :  { %6164 = vpow2.f32 %v4535_v17 }
 0x621   :  { %6166 = vpow2.f32 %v4504_v24 }
 0x629   :  { %v6163_v35 = vpop.eup %6162 }
 0x62a   :  { %v6165_v28 = vpop.eup %6164  ;;  %v4531_v25 = vrot.slane %v6163_v35, %v7503_v1 }
 0x62b   :  { %v6167_v59 = vpop.eup %6166  ;;  %v4541_v29 = vrot.slane %v6165_v28, %v7503_v1 }
 0x62c   :  { %v4533_v13 = vadd.f32 %v6167_v59, %v4531_v25 }
 0x62e   :  { %v4543_v19 = vadd.f32 %v4541_v29, %v4533_v13 }
 0x630   :  { %6168 = vlog2.f32 %v4543_v19 }
 0x63a   :  { %v6169_v47 = vpop.eup %6168 }
 0x63b   :  { %v4545_v51 = vmul.f32 0.6931472, %v6169_v47 }
 0x63d   :  { %v4546_v58 = vadd.f32 %v4545_v51, %v4502_v0 }
 0x63f   :  { %v4548_v55 = vrot.slane %v4546_v58, 7 }
 0x641   :  { %v4550_v49 = vadd.f32 %v4548_v55, %v7469_v57 }
 0x643   :  { %v4563_v22 = vrot.slane %v4550_v49, 4 }
 0x645   :  { %4569 = vrot.lane.b32.xlu0 %v4563_v22, %s6205_s6  ;;  %4564 = vrot.lane.b32.xlu1 %v4563_v22, %s6206_s0 }
 0x6b7   :  { %v4570_v38 = vpop.permute.xlu0 %4569  ;;  %v4565_v9 = vpop.permute.xlu1 %4564 }
 0x6b8   :  { %v4572_v4 = vsel %vm4238_vm1, -1e+30, %v4570_v38  ;;  %v4567_v7 = vsel %vm4232_vm5, -1e+30, %v4565_v9 }
 0x6b9   :  { %v4573_v44 = vsel %vm4212_vm7, %v4572_v4, -1e+30  ;;  %v4568_v32 = vsel %vm4210_vm6, %v4567_v7, -1e+30 }
 0x6ba   :  { %v4578_v62 = vrot.slane %v4568_v32, %v7503_v1  ;;  %v4585_v45 = vrot.slane %v4573_v44, %v7503_v1 }
 0x6bc   :  { %v4580_v41 = vmax.f32 %v4550_v49, %v4578_v62 }
 0x6be   :  { %v4587_v48 = vmax.f32 %v4580_v41, %v4585_v45 }
 0x6c0   :  { %v4592_v26 = vcombine.high %v4587_v48, %v4587_v48  ;;  %v4588_v18 = vsub.f32 %v4550_v49, %v4587_v48 }
 0x6c2   :  { %v4599_v10 = vrot.slane %v4592_v26, %v7514_v50  ;;  %v4589_v27 = vmul.f32 1.442695, %v4588_v18 }
 0x6c4   :  { %v4606_v14 = vrot.slane %v4599_v10, %v7514_v50 }
 0x6c6   :  { %v4608_v33 = vsub.f32 %v4568_v32, %v4606_v14  ;;  %v4618_v31 = vsub.f32 %v4573_v44, %v4606_v14 }
 0x6c8   :  { %v4609_v42 = vmul.f32 1.442695, %v4608_v33  ;;  %v4619_v16 = vmul.f32 1.442695, %v4618_v31 }
 0x6ca   :  { %6170 = vpow2.f32 %v4609_v42 }
 0x6cb   :  { %6172 = vpow2.f32 %v4619_v16 }
 0x6cc   :  { %6174 = vpow2.f32 %v4589_v27 }
 0x6d4   :  { %v6171_v39 = vpop.eup %6170 }
 0x6d5   :  { %v6173_v23 = vpop.eup %6172  ;;  %v4615_v53 = vrot.slane %v6171_v39, %v7503_v1 }
 0x6d6   :  { %v6175_v56 = vpop.eup %6174  ;;  %v4625_v3 = vrot.slane %v6173_v23, %v7503_v1 }
 0x6d7   :  { %v4617_v43 = vadd.f32 %v6175_v56, %v4615_v53 }
 0x6d9   :  { %v4627_v46 = vadd.f32 %v4625_v3, %v4617_v43 }
 0x6db   :  { %6176 = vlog2.f32 %v4627_v46 }
 0x6e5   :  { %v6177_v36 = vpop.eup %6176 }
 0x6e6   :  { %v4629_v40 = vmul.f32 0.6931472, %v6177_v36 }
 0x6e8   :  { %v4630_v63 = vadd.f32 %v4629_v40, %v4587_v48 }
 0x6ea   :  { %v4632_v21 = vrot.slane %v4630_v63, 7 }
 0x6ec   :  { %v4634_v34 = vadd.f32 %v4632_v21, %v7469_v57 }
 0x6ee   :  { %v4647_v5 = vrot.slane %v4634_v34, 5 }
 0x6f0   :  { %4653 = vrot.lane.b32.xlu0 %v4647_v5, %s6205_s6  ;;  %4648 = vrot.lane.b32.xlu1 %v4647_v5, %s6206_s0 }
 0x762   :  { %v4654_v11 = vpop.permute.xlu0 %4653  ;;  %v4649_v20 = vpop.permute.xlu1 %4648 }
 0x763   :  { %v4656_v30 = vsel %vm4238_vm1, -1e+30, %v4654_v11  ;;  %v4651_v0 = vsel %vm4232_vm5, -1e+30, %v4649_v20 }
 0x764   :  { %v4657_v61 = vsel %vm4212_vm7, %v4656_v30, -1e+30  ;;  %v4652_v54 = vsel %vm4210_vm6, %v4651_v0, -1e+30 }
 0x765   :  { %v4662_v12 = vrot.slane %v4652_v54, %v7503_v1  ;;  %v4669_v6 = vrot.slane %v4657_v61, %v7503_v1 }
 0x767   :  { %v4664_v60 = vmax.f32 %v4634_v34, %v4662_v12 }
 0x769   :  { %v4671_v15 = vmax.f32 %v4664_v60, %v4669_v6 }
 0x76b   :  { %v4676_v37 = vcombine.high %v4671_v15, %v4671_v15  ;;  %v4672_v17 = vsub.f32 %v4634_v34, %v4671_v15 }
 0x76d   :  { %v4683_v24 = vrot.slane %v4676_v37, %v7514_v50  ;;  %v4673_v59 = vmul.f32 1.442695, %v4672_v17 }
 0x76f   :  { %v4684_v2 = vcombine.high %v4683_v24, %v4683_v24 }
 0x771   :  { %v4691_v35 = vrot.slane %v4684_v2, %v7514_v50 }
 0x773   :  { %v4693_v28 = vsub.f32 %v4652_v54, %v4691_v35  ;;  %v4703_v25 = vsub.f32 %v4657_v61, %v4691_v35 }
 0x775   :  { %v4694_v13 = vmul.f32 1.442695, %v4693_v28  ;;  %v4704_v29 = vmul.f32 1.442695, %v4703_v25 }
 0x777   :  { %6178 = vpow2.f32 %v4694_v13 }
 0x778   :  { %6180 = vpow2.f32 %v4704_v29 }
 0x779   :  { %6182 = vpow2.f32 %v4673_v59 }
 0x781   :  { %v6179_v19 = vpop.eup %6178 }
 0x782   :  { %v6181_v47 = vpop.eup %6180  ;;  %v4700_v51 = vrot.slane %v6179_v19, %v7503_v1 }
 0x783   :  { %v6183_v58 = vpop.eup %6182  ;;  %v4710_v49 = vrot.slane %v6181_v47, %v7503_v1 }
 0x784   :  { %v4702_v55 = vadd.f32 %v6183_v58, %v4700_v51 }
 0x786   :  { %v4712_v22 = vadd.f32 %v4710_v49, %v4702_v55 }
 0x788   :  { %6184 = vlog2.f32 %v4712_v22 }
 0x792   :  { %v6185_v38 = vpop.eup %6184 }
 0x793   :  { %v4714_v9 = vmul.f32 0.6931472, %v6185_v38 }
 0x795   :  { %v4715_v4 = vadd.f32 %v4714_v9, %v4671_v15 }
 0x797   :  { %v4717_v7 = vrot.slane %v4715_v4, 7 }
 0x799   :  { %v4719_v44 = vadd.f32 %v4717_v7, %v7469_v57 }
 0x79b   :  { %v4732_v32 = vrot.slane %v4719_v44, 6 }
 0x79d   :  { %4738 = vrot.lane.b32.xlu0 %v4732_v32, %s6205_s6  ;;  %4733 = vrot.lane.b32.xlu1 %v4732_v32, %s6206_s0 }
 0x80f   :  { %v4739_v62 = vpop.permute.xlu0 %4738  ;;  %v4734_v45 = vpop.permute.xlu1 %4733 }
 0x810   :  { %v4741_v41 = vsel %vm4238_vm1, -1e+30, %v4739_v62  ;;  %v4736_v48 = vsel %vm4232_vm5, -1e+30, %v4734_v45 }
 0x811   :  { %v4742_v26 = vsel %vm4212_vm7, %v4741_v41, -1e+30  ;;  %v4737_v10 = vsel %vm4210_vm6, %v4736_v48, -1e+30 }
 0x812   :  { %v4747_v18 = vrot.slane %v4737_v10, %v7503_v1  ;;  %v4754_v14 = vrot.slane %v4742_v26, %v7503_v1 }
 0x814   :  { %v4749_v33 = vmax.f32 %v4719_v44, %v4747_v18 }
 0x816   :  { %v4756_v31 = vmax.f32 %v4749_v33, %v4754_v14 }
 0x818   :  { %v4761_v27 = vcombine.high %v4756_v31, %v4756_v31  ;;  %v4757_v39 = vsub.f32 %v4719_v44, %v4756_v31 }
 0x81a   :  { %v4768_v42 = vrot.slane %v4761_v27, %v7514_v50  ;;  %v4758_v8 = vmul.f32 1.442695, %v4757_v39 }
 0x81c   :  { %v4775_v16 = vrot.slane %v4768_v42, %v7514_v50 }
 0x81e   :  { %v4776_v23 = vcombine.high %v4775_v16, %v4775_v16 }
 0x820   :  { %v4778_v53 = vsub.f32 %v4737_v10, %v4776_v23  ;;  %v4788_v56 = vsub.f32 %v4742_v26, %v4776_v23 }
 0x822   :  { %v4779_v43 = vmul.f32 1.442695, %v4778_v53  ;;  %v4789_v3 = vmul.f32 1.442695, %v4788_v56 }
 0x824   :  { %6186 = vpow2.f32 %v4779_v43 }
 0x825   :  { %6188 = vpow2.f32 %v4789_v3 }
 0x826   :  { %6190 = vpow2.f32 %v4758_v8 }
 0x82e   :  { %v6187_v52 = vpop.eup %6186 }
 0x82f   :  { %v6189_v46 = vpop.eup %6188  ;;  %v4785_v36 = vrot.slane %v6187_v52, %v7503_v1 }
 0x830   :  { %v6191_v40 = vpop.eup %6190  ;;  %v4795_v21 = vrot.slane %v6189_v46, %v7503_v1 }
 0x831   :  { %v4787_v63 = vadd.f32 %v6191_v40, %v4785_v36 }
 0x833   :  { %v4797_v34 = vadd.f32 %v4795_v21, %v4787_v63 }
 0x835   :  { %6192 = vlog2.f32 %v4797_v34 }
 0x83f   :  { %v6193_v50 = vpop.eup %6192 }
 0x840   :  { %v4799_v5 = vmul.f32 0.6931472, %v6193_v50 }
 0x842   :  { %v4800_v11 = vadd.f32 %v4799_v5, %v4756_v31 }
 0x844   :  { %v4802_v20 = vrot.slane %v4800_v11, 7 }
 0x846   :  { %v4804_v30 = vadd.f32 %v4802_v20, %v7469_v57 }
 0x848   :  { %4815 = vst [vmem:[%s7602_s4 - $0x7] sm:$0x80] %v4804_v30 }

</bundles_post_ra>
